<compile_context>
chip_gen: v6e
topology: v6e:2x2x1
jax: 0.10.0
libtpu: 0.0.40
codegen_flags: <defaults>
</compile_context>

<pallas_src>
import jax
import jax.numpy as jnp
from jax import lax
from jax.experimental import pallas as pl
from jax.experimental.pallas import tpu as pltpu


def _pick_row_tile(H, W, C, itemsize, budget_bytes):
    """Largest divisor TH of H whose (TH+2)-row halo tile fits the VMEM budget.

    Prefers >= 2 row tiles per image (pipeline depth + megacore sharding) once the
    image is tall enough that the 2/TH halo re-read overhead stays small.
    """
    divisors = [d for d in range(1, H + 1) if H % d == 0]
    fitting = [d for d in divisors if (d + 2) * W * C * itemsize <= budget_bytes]
    if not fitting:
        return 1
    smaller = [d for d in fitting if d < H]
    if H >= 16 and smaller:
        return max(smaller)
    return max(fitting)


def _make_kernel(TH, W, C):
    """Kernel working on a flattened (rows*W, C) spatial layout.

    TH : image rows per tile, W : (padded) image width, C : (padded) channels.
    """
    S = TH * W          # spatial elements produced per tile
    P = (TH + 2) * W    # spatial elements including the one-row halo on each side

    def kernel(x_ref, top_ref, bot_ref, w_ref, b_ref, o_ref, xpad_ref):
        i = pl.program_id(1)
        last = pl.num_programs(1) - 1

        # ---- assemble the H-halo tile in VMEM: [row above | TH rows | row below] ----
        # All writes are aligned (offsets are multiples of W, and W % 8 == 0).
        xpad_ref[pl.ds(W, S), :] = x_ref[0]

        @pl.when(i == 0)                      # top border of the image -> zero pad row
        def _():
            xpad_ref[pl.ds(0, W), :] = jnp.zeros((W, C), dtype=xpad_ref.dtype)

        @pl.when(i > 0)
        def _():
            xpad_ref[pl.ds(0, W), :] = top_ref[0]

        @pl.when(i == last)                   # bottom border of the image -> zero pad row
        def _():
            xpad_ref[pl.ds(S + W, W), :] = jnp.zeros((W, C), dtype=xpad_ref.dtype)

        @pl.when(i < last)
        def _():
            xpad_ref[pl.ds(S + W, W), :] = bot_ref[0]

        x_all = xpad_ref[...]                 # (P, C), native input dtype

        # Column index within each image row, for zeroing the wrapped W-boundary.
        col = lax.broadcasted_iota(jnp.int32, (P, 1), 0) % W
        zero = jnp.array(0, dtype=x_all.dtype)

        # ---- accumulate the 9 taps (f32 accumulator seeded with the bias) ----
        acc = jnp.broadcast_to(b_ref[0, 0, :].astype(jnp.float32), (S, C))
        for dw in range(3):
            if dw == 0:
                # left neighbour: roll towards higher index, zero first column
                xs = jnp.where(col > 0, pltpu.roll(x_all, 1, axis=0), zero)
            elif dw == 1:
                xs = x_all
            else:
                # right neighbour: roll towards lower index (shift P-1), zero last column
                xs = jnp.where(col < W - 1, pltpu.roll(x_all, P - 1, axis=0), zero)
            for dh in range(3):
                tap = w_ref[dh, dw, :].astype(jnp.float32)          # (C,)
                # Aligned slice along the flattened row axis: free address offset.
                acc = acc + xs[dh * W: dh * W + S] * tap

        o_ref[0] = acc.astype(o_ref.dtype)

    return kernel


def dwconv_forward(x, weight, bias, H, W, *, row_budget_bytes=2 << 20):
    """x: (B, N, C), N = H*W.  weight: (C, 1, 3, 3) (PyTorch layout).  bias: (C,)."""
    B, N, C = x.shape
    assert N == H * W, "sequence length must equal H*W"

    w_hwc = jnp.transpose(weight[:, 0, :, :], (1, 2, 0))   # (3, 3, C)
    b_vec = bias

    # Lane/sublane alignment.  Fast path (production sizes): C % 128 == 0, W % 8 == 0,
    # in which case no wrapper-side data movement happens at all.
    c_pad = (-C) % 128
    w_pad = (-W) % 8
    if c_pad or w_pad:
        # Fallback: zero-pad channels / width (one extra XLA pad pass; semantics are
        # preserved because the padded columns are zero and sliced away afterwards).
        x4 = x.reshape(B, H, W, C)
        x4 = jnp.pad(x4, ((0, 0), (0, 0), (0, w_pad), (0, c_pad)))
        Wp, Cp = W + w_pad, C + c_pad
        x_in = x4.reshape(B, H * Wp, Cp)
        w_hwc = jnp.pad(w_hwc, ((0, 0), (0, 0), (0, c_pad)))
        b_vec = jnp.pad(b_vec, ((0, c_pad),))
    else:
        Wp, Cp = W, C
        x_in = x                                            # zero-copy fast path

    itemsize = jnp.dtype(x.dtype).itemsize
    TH = _pick_row_tile(H, Wp, Cp, itemsize, row_budget_bytes)
    nH = H // TH
    S = TH * Wp

    # VMEM budget (double-buffered main in/out blocks + single scratch + halo rows)
    # stays well under the default scoped limits (16 MiB v5e, 32 MiB v6e/v7x), so no
    # vmem_limit_bytes override is needed.
    # TODO(synk): if profiling shows exposed DMA at small TH, bump the main input
    # spec to pipeline_mode=pl.Buffered(3).
    out = pl.pallas_call(
        _make_kernel(TH, Wp, Cp),
        out_shape=jax.ShapeDtypeStruct((B, H * Wp, Cp), x.dtype),
        grid_spec=pltpu.PrefetchScalarGridSpec(
            num_scalar_prefetch=0,
            grid=(B, nH),
            in_specs=[
                # main row tile (TH image rows)
                pl.BlockSpec((1, S, Cp), lambda b, i: (b, i, 0)),
                # one image row above the tile (clamped at the top border; kernel zeroes it)
                pl.BlockSpec((1, Wp, Cp),
                             lambda b, i: (b, jnp.maximum(i * TH - 1, 0), 0)),
                # one image row below the tile (clamped at the bottom border)
                pl.BlockSpec((1, Wp, Cp),
                             lambda b, i: (b, jnp.minimum((i + 1) * TH, H - 1), 0)),
                # depthwise weights and bias (tiny, constant blocks)
                pl.BlockSpec((3, 3, Cp), lambda b, i: (0, 0, 0)),
                pl.BlockSpec((1, 1, Cp), lambda b, i: (0, 0, 0)),
            ],
            out_specs=pl.BlockSpec((1, S, Cp), lambda b, i: (b, i, 0)),
            scratch_shapes=[pltpu.VMEM(((TH + 2) * Wp, Cp), x.dtype)],
        ),
        compiler_params=pltpu.CompilerParams(
            dimension_semantics=("parallel", "parallel")),
    )(x_in, x_in, x_in, w_hwc, b_vec.reshape(1, 1, Cp))

    if c_pad or w_pad:
        out = out.reshape(B, H, Wp, Cp)[:, :, :W, :C].reshape(B, N, C)
    return out


def _reference(x, weight, bias, H, W):
    """Pure-JAX depthwise conv reference (NCHW, groups=C), full f32 precision."""
    B, N, C = x.shape
    x_nchw = jnp.transpose(x, (0, 2, 1)).reshape(B, C, H, W)
    out = lax.conv_general_dilated(
        x_nchw, weight,
        window_strides=(1, 1), padding=((1, 1), (1, 1)),
        dimension_numbers=("NCHW", "OIHW", "NCHW"),
        feature_group_count=C,
        precision=lax.Precision.HIGHEST)
    out = out + bias.reshape(1, C, 1, 1)
    return jnp.transpose(out.reshape(B, C, N), (0, 2, 1))


if __name__ == "__main__":
    key = jax.random.PRNGKey(0)
    fwd = jax.jit(dwconv_forward, static_argnums=(3, 4))

    # --- main check: lane-dense fast path (C % 128 == 0, W % 8 == 0) ---
    B, C, H, W = 2, 128, 16, 16
    N = H * W
    kx, kw, kb = jax.random.split(key, 3)
    x = jax.random.normal(kx, (B, N, C), dtype=jnp.float32)
    weight = jax.random.normal(kw, (C, 1, 3, 3), dtype=jnp.float32) * 0.1
    bias = jax.random.normal(kb, (C,), dtype=jnp.float32) * 0.1

    out = jax.block_until_ready(fwd(x, weight, bias, H, W))
    ref = _reference(x, weight, bias, H, W)
    assert out.shape == (B, N, C)
    assert jnp.allclose(out, ref, rtol=1e-4, atol=1e-4), "mismatch vs reference (fast path)"

    # --- secondary check: channel-padding fallback + single-row-tile path ---
    B2, C2, H2, W2 = 2, 32, 8, 8
    k2x, k2w, k2b = jax.random.split(jax.random.PRNGKey(1), 3)
    x2 = jax.random.normal(k2x, (B2, H2 * W2, C2), dtype=jnp.float32)
    w2 = jax.random.normal(k2w, (C2, 1, 3, 3), dtype=jnp.float32) * 0.1
    b2 = jax.random.normal(k2b, (C2,), dtype=jnp.float32) * 0.1
    out2 = jax.block_until_ready(fwd(x2, w2, b2, H2, W2))
    ref2 = _reference(x2, w2, b2, H2, W2)
    assert jnp.allclose(out2, ref2, rtol=1e-4, atol=1e-4), "mismatch vs reference (padded path)"

    print("KERNEL_OK")
</pallas_src>

<mosaic_0001>
module attributes {stable_mosaic.version = 11 : i64} {
  func.func @kernel(%arg0: i32, %arg1: i32, %arg2: memref<1x128x128xf32, #tpu.memory_space<vmem>>, %arg3: memref<1x16x128xf32, #tpu.memory_space<vmem>>, %arg4: memref<1x16x128xf32, #tpu.memory_space<vmem>>, %arg5: memref<3x3x128xf32, #tpu.memory_space<vmem>>, %arg6: memref<1x1x128xf32, #tpu.memory_space<vmem>>, %arg7: memref<1x128x128xf32, #tpu.memory_space<vmem>>, %arg8: memref<160x128xf32, #tpu.memory_space<vmem>>) attributes {dimension_semantics = [#tpu.dimension_semantics<parallel>, #tpu.dimension_semantics<parallel>], iteration_bounds = array<i64: 2, 2>, scalar_prefetch = 0 : i64, scratch_operands = 1 : i64, tpu.core_type = #tpu.core_type<tc>, window_params = [{transform_indices = @transform_0, window_bounds = array<i64: 1, 128, 128>}, {transform_indices = @transform_1, window_bounds = array<i64: 1, 16, 128>}, {transform_indices = @transform_2, window_bounds = array<i64: 1, 16, 128>}, {pipeline_mode = #tpu.pipeline_mode<synchronous>, transform_indices = @transform_3, window_bounds = array<i64: 3, 3, 128>}, {pipeline_mode = #tpu.pipeline_mode<synchronous>, transform_indices = @transform_4, window_bounds = array<i64: 1, 1, 128>}, {transform_indices = @transform_5, window_bounds = array<i64: 1, 128, 128>}]} {
    %c0 = arith.constant 0 : index
    %c0_0 = arith.constant 0 : index
    %c0_1 = arith.constant 0 : index
    %0 = vector.load %arg2[%c0, %c0_0, %c0_1] : memref<1x128x128xf32, #tpu.memory_space<vmem>>, vector<1x128x128xf32>
    %1 = vector.shape_cast %0 : vector<1x128x128xf32> to vector<128x128xf32>
    %c16 = arith.constant 16 : index
    %c0_2 = arith.constant 0 : index
    %2 = vector.load %arg8[%c16, %c0_2] : memref<160x128xf32, #tpu.memory_space<vmem>>, vector<128x128xf32>
    tpu.vector_store %arg8[%c16, %c0_2], %1 {strides = array<i32>} : memref<160x128xf32, #tpu.memory_space<vmem>>, vector<128x128xf32>,
    %c0_i32 = arith.constant 0 : i32
    %3 = arith.cmpi eq, %arg1, %c0_i32 : i32
    %4 = arith.extui %3 : i1 to i32
    %c0_i32_3 = arith.constant 0 : i32
    %5 = arith.cmpi ne, %4, %c0_i32_3 : i32
    scf.if %5 {
      %cst_50 = arith.constant 0.000000e+00 : f32
      %117 = vector.broadcast %cst_50 : f32 to vector<16x128xf32>
      %c0_51 = arith.constant 0 : index
      %c0_52 = arith.constant 0 : index
      %118 = vector.load %arg8[%c0_51, %c0_52] : memref<160x128xf32, #tpu.memory_space<vmem>>, vector<16x128xf32>
      tpu.vector_store %arg8[%c0_51, %c0_52], %117 {strides = array<i32>} : memref<160x128xf32, #tpu.memory_space<vmem>>, vector<16x128xf32>,
    } else {
    }
    %c0_i32_4 = arith.constant 0 : i32
    %6 = arith.cmpi sgt, %arg1, %c0_i32_4 : i32
    %7 = arith.extui %6 : i1 to i32
    %c0_i32_5 = arith.constant 0 : i32
    %8 = arith.cmpi ne, %7, %c0_i32_5 : i32
    scf.if %8 {
      %c0_50 = arith.constant 0 : index
      %c0_51 = arith.constant 0 : index
      %c0_52 = arith.constant 0 : index
      %117 = vector.load %arg3[%c0_50, %c0_51, %c0_52] : memref<1x16x128xf32, #tpu.memory_space<vmem>>, vector<1x16x128xf32>
      %118 = vector.shape_cast %117 : vector<1x16x128xf32> to vector<16x128xf32>
      %c0_53 = arith.constant 0 : index
      %c0_54 = arith.constant 0 : index
      %119 = vector.load %arg8[%c0_53, %c0_54] : memref<160x128xf32, #tpu.memory_space<vmem>>, vector<16x128xf32>
      tpu.vector_store %arg8[%c0_53, %c0_54], %118 {strides = array<i32>} : memref<160x128xf32, #tpu.memory_space<vmem>>, vector<16x128xf32>,
    } else {
    }
    %c1_i32 = arith.constant 1 : i32
    %9 = arith.cmpi eq, %arg1, %c1_i32 : i32
    %10 = arith.extui %9 : i1 to i32
    %c0_i32_6 = arith.constant 0 : i32
    %11 = arith.cmpi ne, %10, %c0_i32_6 : i32
    scf.if %11 {
      %cst_50 = arith.constant 0.000000e+00 : f32
      %117 = vector.broadcast %cst_50 : f32 to vector<16x128xf32>
      %c144 = arith.constant 144 : index
      %c0_51 = arith.constant 0 : index
      %118 = vector.load %arg8[%c144, %c0_51] : memref<160x128xf32, #tpu.memory_space<vmem>>, vector<16x128xf32>
      tpu.vector_store %arg8[%c144, %c0_51], %117 {strides = array<i32>} : memref<160x128xf32, #tpu.memory_space<vmem>>, vector<16x128xf32>,
    } else {
    }
    %c1_i32_7 = arith.constant 1 : i32
    %12 = arith.cmpi slt, %arg1, %c1_i32_7 : i32
    %13 = arith.extui %12 : i1 to i32
    %c0_i32_8 = arith.constant 0 : i32
    %14 = arith.cmpi ne, %13, %c0_i32_8 : i32
    scf.if %14 {
      %c0_50 = arith.constant 0 : index
      %c0_51 = arith.constant 0 : index
      %c0_52 = arith.constant 0 : index
      %117 = vector.load %arg4[%c0_50, %c0_51, %c0_52] : memref<1x16x128xf32, #tpu.memory_space<vmem>>, vector<1x16x128xf32>
      %118 = vector.shape_cast %117 : vector<1x16x128xf32> to vector<16x128xf32>
      %c144 = arith.constant 144 : index
      %c0_53 = arith.constant 0 : index
      %119 = vector.load %arg8[%c144, %c0_53] : memref<160x128xf32, #tpu.memory_space<vmem>>, vector<16x128xf32>
      tpu.vector_store %arg8[%c144, %c0_53], %118 {strides = array<i32>} : memref<160x128xf32, #tpu.memory_space<vmem>>, vector<16x128xf32>,
    } else {
    }
    %c0_9 = arith.constant 0 : index
    %c0_10 = arith.constant 0 : index
    %15 = vector.load %arg8[%c0_9, %c0_10] : memref<160x128xf32, #tpu.memory_space<vmem>>, vector<160x128xf32>
    %16 = tpu.iota {dimensions = array<i32: 0>} : vector<160x1xi32>
    %c16_i32 = arith.constant 16 : i32
    %c0_i32_11 = arith.constant 0 : i32
    %17 = arith.cmpi eq, %c16_i32, %c0_i32_11 : i32
    %c1_i32_12 = arith.constant 1 : i32
    %18 = arith.select %17, %c1_i32_12, %c16_i32 : i32
    %19 = vector.broadcast %18 : i32 to vector<160x1xi32>
    %20 = arith.remsi %16, %19 : vector<160x1xi32>
    %c0_i32_13 = arith.constant 0 : i32
    %21 = vector.broadcast %c0_i32_13 : i32 to vector<160x1xi32>
    %22 = arith.cmpi ne, %20, %21 : vector<160x1xi32>
    %c0_i32_14 = arith.constant 0 : i32
    %23 = vector.broadcast %c0_i32_14 : i32 to vector<160x1xi32>
    %24 = arith.cmpi slt, %20, %23 : vector<160x1xi32>
    %c0_i32_15 = arith.constant 0 : i32
    %25 = arith.cmpi slt, %18, %c0_i32_15 : i32
    %26 = vector.broadcast %25 : i1 to vector<160x1xi1>
    %27 = vector.broadcast %26 : vector<160x1xi1> to vector<160x1xi1>
    %28 = arith.xori %24, %27 : vector<160x1xi1>
    %29 = arith.andi %28, %22 : vector<160x1xi1>
    %30 = vector.broadcast %18 : i32 to vector<160x1xi32>
    %31 = arith.addi %20, %30 : vector<160x1xi32>
    %32 = arith.select %29, %31, %20 : vector<160x1xi1>, vector<160x1xi32>
    %c0_16 = arith.constant 0 : index
    %c0_17 = arith.constant 0 : index
    %c0_18 = arith.constant 0 : index
    %33 = vector.load %arg6[%c0_16, %c0_17, %c0_18] : memref<1x1x128xf32, #tpu.memory_space<vmem>>, vector<1x1x128xf32>
    %34 = vector.shape_cast %33 : vector<1x1x128xf32> to vector<128xf32>
    %35 = vector.shape_cast %34 : vector<128xf32> to vector<1x128xf32>
    %36 = vector.broadcast %35 : vector<1x128xf32> to vector<128x128xf32>
    %c0_i32_19 = arith.constant 0 : i32
    %37 = vector.broadcast %c0_i32_19 : i32 to vector<160x1xi32>
    %38 = arith.cmpi sgt, %32, %37 : vector<160x1xi32>
    %c1_i32_20 = arith.constant 1 : i32
    %39 = tpu.dynamic_rotate %15 by %c1_i32_20 dim 0 : vector<160x128xf32>, i32 -> vector<160x128xf32>
    %cst = arith.constant 0.000000e+00 : f32
    %40 = vector.shape_cast %38 : vector<160x1xi1> to vector<160x1xi1>
    %41 = vector.broadcast %40 : vector<160x1xi1> to vector<160x128xi1>
    %42 = vector.broadcast %cst : f32 to vector<160x128xf32>
    %43 = arith.select %41, %39, %42 : vector<160x128xi1>, vector<160x128xf32>
    %c0_21 = arith.constant 0 : index
    %c0_22 = arith.constant 0 : index
    %c0_23 = arith.constant 0 : index
    %44 = vector.load %arg5[%c0_21, %c0_22, %c0_23] : memref<3x3x128xf32, #tpu.memory_space<vmem>>, vector<1x1x128xf32>
    %45 = vector.shape_cast %44 : vector<1x1x128xf32> to vector<128xf32>
    %46 = vector.extract_strided_slice %43 {offsets = [0, 0], sizes = [128, 128], strides = [1, 1]} : vector<160x128xf32> to vector<128x128xf32>
    %47 = vector.shape_cast %45 : vector<128xf32> to vector<1x128xf32>
    %48 = vector.broadcast %47 : vector<1x128xf32> to vector<128x128xf32>
    %49 = arith.mulf %46, %48 : vector<128x128xf32>
    %50 = arith.addf %36, %49 : vector<128x128xf32>
    %c1 = arith.constant 1 : index
    %c0_24 = arith.constant 0 : index
    %c0_25 = arith.constant 0 : index
    %51 = vector.load %arg5[%c1, %c0_24, %c0_25] : memref<3x3x128xf32, #tpu.memory_space<vmem>>, vector<1x1x128xf32>
    %52 = vector.shape_cast %51 : vector<1x1x128xf32> to vector<128xf32>
    %53 = vector.extract_strided_slice %43 {offsets = [16, 0], sizes = [128, 128], strides = [1, 1]} : vector<160x128xf32> to vector<128x128xf32>
    %54 = vector.shape_cast %52 : vector<128xf32> to vector<1x128xf32>
    %55 = vector.broadcast %54 : vector<1x128xf32> to vector<128x128xf32>
    %56 = arith.mulf %53, %55 : vector<128x128xf32>
    %57 = arith.addf %50, %56 : vector<128x128xf32>
    %c2 = arith.constant 2 : index
    %c0_26 = arith.constant 0 : index
    %c0_27 = arith.constant 0 : index
    %58 = vector.load %arg5[%c2, %c0_26, %c0_27] : memref<3x3x128xf32, #tpu.memory_space<vmem>>, vector<1x1x128xf32>
    %59 = vector.shape_cast %58 : vector<1x1x128xf32> to vector<128xf32>
    %60 = vector.extract_strided_slice %43 {offsets = [32, 0], sizes = [128, 128], strides = [1, 1]} : vector<160x128xf32> to vector<128x128xf32>
    %61 = vector.shape_cast %59 : vector<128xf32> to vector<1x128xf32>
    %62 = vector.broadcast %61 : vector<1x128xf32> to vector<128x128xf32>
    %63 = arith.mulf %60, %62 : vector<128x128xf32>
    %64 = arith.addf %57, %63 : vector<128x128xf32>
    %c0_28 = arith.constant 0 : index
    %c1_29 = arith.constant 1 : index
    %c0_30 = arith.constant 0 : index
    %65 = vector.load %arg5[%c0_28, %c1_29, %c0_30] : memref<3x3x128xf32, #tpu.memory_space<vmem>>, vector<1x1x128xf32>
    %66 = vector.shape_cast %65 : vector<1x1x128xf32> to vector<128xf32>
    %67 = vector.extract_strided_slice %15 {offsets = [0, 0], sizes = [128, 128], strides = [1, 1]} : vector<160x128xf32> to vector<128x128xf32>
    %68 = vector.shape_cast %66 : vector<128xf32> to vector<1x128xf32>
    %69 = vector.broadcast %68 : vector<1x128xf32> to vector<128x128xf32>
    %70 = arith.mulf %67, %69 : vector<128x128xf32>
    %71 = arith.addf %64, %70 : vector<128x128xf32>
    %c1_31 = arith.constant 1 : index
    %c1_32 = arith.constant 1 : index
    %c0_33 = arith.constant 0 : index
    %72 = vector.load %arg5[%c1_31, %c1_32, %c0_33] : memref<3x3x128xf32, #tpu.memory_space<vmem>>, vector<1x1x128xf32>
    %73 = vector.shape_cast %72 : vector<1x1x128xf32> to vector<128xf32>
    %74 = vector.extract_strided_slice %15 {offsets = [16, 0], sizes = [128, 128], strides = [1, 1]} : vector<160x128xf32> to vector<128x128xf32>
    %75 = vector.shape_cast %73 : vector<128xf32> to vector<1x128xf32>
    %76 = vector.broadcast %75 : vector<1x128xf32> to vector<128x128xf32>
    %77 = arith.mulf %74, %76 : vector<128x128xf32>
    %78 = arith.addf %71, %77 : vector<128x128xf32>
    %c2_34 = arith.constant 2 : index
    %c1_35 = arith.constant 1 : index
    %c0_36 = arith.constant 0 : index
    %79 = vector.load %arg5[%c2_34, %c1_35, %c0_36] : memref<3x3x128xf32, #tpu.memory_space<vmem>>, vector<1x1x128xf32>
    %80 = vector.shape_cast %79 : vector<1x1x128xf32> to vector<128xf32>
    %81 = vector.extract_strided_slice %15 {offsets = [32, 0], sizes = [128, 128], strides = [1, 1]} : vector<160x128xf32> to vector<128x128xf32>
    %82 = vector.shape_cast %80 : vector<128xf32> to vector<1x128xf32>
    %83 = vector.broadcast %82 : vector<1x128xf32> to vector<128x128xf32>
    %84 = arith.mulf %81, %83 : vector<128x128xf32>
    %85 = arith.addf %78, %84 : vector<128x128xf32>
    %c15_i32 = arith.constant 15 : i32
    %86 = vector.broadcast %c15_i32 : i32 to vector<160x1xi32>
    %87 = arith.cmpi slt, %32, %86 : vector<160x1xi32>
    %c159_i32 = arith.constant 159 : i32
    %88 = tpu.dynamic_rotate %15 by %c159_i32 dim 0 : vector<160x128xf32>, i32 -> vector<160x128xf32>
    %cst_37 = arith.constant 0.000000e+00 : f32
    %89 = vector.shape_cast %87 : vector<160x1xi1> to vector<160x1xi1>
    %90 = vector.broadcast %89 : vector<160x1xi1> to vector<160x128xi1>
    %91 = vector.broadcast %cst_37 : f32 to vector<160x128xf32>
    %92 = arith.select %90, %88, %91 : vector<160x128xi1>, vector<160x128xf32>
    %c0_38 = arith.constant 0 : index
    %c2_39 = arith.constant 2 : index
    %c0_40 = arith.constant 0 : index
    %93 = vector.load %arg5[%c0_38, %c2_39, %c0_40] : memref<3x3x128xf32, #tpu.memory_space<vmem>>, vector<1x1x128xf32>
    %94 = vector.shape_cast %93 : vector<1x1x128xf32> to vector<128xf32>
    %95 = vector.extract_strided_slice %92 {offsets = [0, 0], sizes = [128, 128], strides = [1, 1]} : vector<160x128xf32> to vector<128x128xf32>
    %96 = vector.shape_cast %94 : vector<128xf32> to vector<1x128xf32>
    %97 = vector.broadcast %96 : vector<1x128xf32> to vector<128x128xf32>
    %98 = arith.mulf %95, %97 : vector<128x128xf32>
    %99 = arith.addf %85, %98 : vector<128x128xf32>
    %c1_41 = arith.constant 1 : index
    %c2_42 = arith.constant 2 : index
    %c0_43 = arith.constant 0 : index
    %100 = vector.load %arg5[%c1_41, %c2_42, %c0_43] : memref<3x3x128xf32, #tpu.memory_space<vmem>>, vector<1x1x128xf32>
    %101 = vector.shape_cast %100 : vector<1x1x128xf32> to vector<128xf32>
    %102 = vector.extract_strided_slice %92 {offsets = [16, 0], sizes = [128, 128], strides = [1, 1]} : vector<160x128xf32> to vector<128x128xf32>
    %103 = vector.shape_cast %101 : vector<128xf32> to vector<1x128xf32>
    %104 = vector.broadcast %103 : vector<1x128xf32> to vector<128x128xf32>
    %105 = arith.mulf %102, %104 : vector<128x128xf32>
    %106 = arith.addf %99, %105 : vector<128x128xf32>
    %c2_44 = arith.constant 2 : index
    %c2_45 = arith.constant 2 : index
    %c0_46 = arith.constant 0 : index
    %107 = vector.load %arg5[%c2_44, %c2_45, %c0_46] : memref<3x3x128xf32, #tpu.memory_space<vmem>>, vector<1x1x128xf32>
    %108 = vector.shape_cast %107 : vector<1x1x128xf32> to vector<128xf32>
    %109 = vector.extract_strided_slice %92 {offsets = [32, 0], sizes = [128, 128], strides = [1, 1]} : vector<160x128xf32> to vector<128x128xf32>
    %110 = vector.shape_cast %108 : vector<128xf32> to vector<1x128xf32>
    %111 = vector.broadcast %110 : vector<1x128xf32> to vector<128x128xf32>
    %112 = arith.mulf %109, %111 : vector<128x128xf32>
    %113 = arith.addf %106, %112 : vector<128x128xf32>
    %c0_47 = arith.constant 0 : index
    %c0_48 = arith.constant 0 : index
    %c0_49 = arith.constant 0 : index
    %114 = vector.load %arg7[%c0_47, %c0_48, %c0_49] : memref<1x128x128xf32, #tpu.memory_space<vmem>>, vector<1x128x128xf32>
    %115 = vector.shape_cast %114 : vector<1x128x128xf32> to vector<128x128xf32>
    %116 = vector.shape_cast %113 : vector<128x128xf32> to vector<1x128x128xf32>
    tpu.vector_store %arg7[%c0_47, %c0_48, %c0_49], %116 {strides = array<i32>} : memref<1x128x128xf32, #tpu.memory_space<vmem>>, vector<1x128x128xf32>,
    return
  }
  func.func @transform_0(%arg0: i32, %arg1: i32) -> (i32, i32, i32) {
    %c0_i32 = arith.constant 0 : i32
    %c0_i32_0 = arith.constant 0 : i32
    return %arg0, %arg1, %c0_i32 : i32, i32, i32
  }
  func.func @transform_1(%arg0: i32, %arg1: i32) -> (i32, i32, i32) {
    %c8_i32 = arith.constant 8 : i32
    %0 = arith.muli %arg1, %c8_i32 : i32
    %c1_i32 = arith.constant 1 : i32
    %1 = arith.subi %0, %c1_i32 : i32
    %c0_i32 = arith.constant 0 : i32
    %2 = arith.maxsi %1, %c0_i32 : i32
    %c0_i32_0 = arith.constant 0 : i32
    %c0_i32_1 = arith.constant 0 : i32
    return %arg0, %2, %c0_i32_0 : i32, i32, i32
  }
  func.func @transform_2(%arg0: i32, %arg1: i32) -> (i32, i32, i32) {
    %c1_i32 = arith.constant 1 : i32
    %0 = arith.addi %arg1, %c1_i32 : i32
    %c8_i32 = arith.constant 8 : i32
    %1 = arith.muli %0, %c8_i32 : i32
    %c15_i32 = arith.constant 15 : i32
    %2 = arith.minsi %1, %c15_i32 : i32
    %c0_i32 = arith.constant 0 : i32
    %c0_i32_0 = arith.constant 0 : i32
    return %arg0, %2, %c0_i32 : i32, i32, i32
  }
  func.func @transform_3(%arg0: i32, %arg1: i32) -> (i32, i32, i32) {
    %c0_i32 = arith.constant 0 : i32
    %c0_i32_0 = arith.constant 0 : i32
    %c0_i32_1 = arith.constant 0 : i32
    %c0_i32_2 = arith.constant 0 : i32
    return %c0_i32, %c0_i32_0, %c0_i32_1 : i32, i32, i32
  }
  func.func @transform_4(%arg0: i32, %arg1: i32) -> (i32, i32, i32) {
    %c0_i32 = arith.constant 0 : i32
    %c0_i32_0 = arith.constant 0 : i32
    %c0_i32_1 = arith.constant 0 : i32
    %c0_i32_2 = arith.constant 0 : i32
    return %c0_i32, %c0_i32_0, %c0_i32_1 : i32, i32, i32
  }
  func.func @transform_5(%arg0: i32, %arg1: i32) -> (i32, i32, i32) {
    %c0_i32 = arith.constant 0 : i32
    %c0_i32_0 = arith.constant 0 : i32
    return %arg0, %arg1, %c0_i32 : i32, i32, i32
  }
}

</mosaic_0001>

<bundles_post_ra>
// kernel: dwconv_forward.1
= control target key start
LH: loop header
LB: loop body
LE: loop exit
PB: predicated region body
PF: predicated region fallthrough
CT: control target
= control target key end

     0   :  { %s3017_s0 = inlined_call_operand.hbm [shape: f32[2,256,128], index: 0, kind: input, shape index: {}, may-alias: {0,1,2}]   ;;  %s3018_s1 = inlined_call_operand.hbm [shape: f32[2,256,128], index: 1, kind: input, shape index: {}, may-alias: {0,1,2}]   ;;  %s3019_s2 = inlined_call_operand.hbm [shape: f32[2,256,128], index: 2, kind: input, shape index: {}, may-alias: {0,1,2}]   ;;  %s3020_s3 = inlined_call_operand.vmem [shape: f32[3,3,128], index: 3, kind: input, shape index: {}]   ;;  %s3021_s4 = inlined_call_operand.vmem [shape: f32[1,1,128], index: 4, kind: input, shape index: {}]   ;;  %s3022_s5 = inlined_call_operand.hbm [shape: f32[2,256,128], index: 5, kind: output, shape index: {}]  }
   0x1   :  { %3044 = sst [smem:[#allocation27_spill]] %s3017_s0 }
   0x2   :  { %3045 = sst [smem:[#allocation28_spill]] %s3018_s1 }
   0x3   :  { %3046 = sst [smem:[#allocation29_spill]] %s3019_s2 }
   0x4   :  { %3047 = sst [smem:[#allocation30_spill]] %s3020_s3 }
   0x5   :  { %3048 = sst [smem:[#allocation31_spill]] %s3021_s4 }
   0x6   :  { %3049 = sst [smem:[#allocation32_spill]] %s3022_s5 }
   0x7   :  { %10 = vsyncpa [#allocation4], 0 }
   0x8   :  { %12 = vsyncpa [#allocation4 + $0x1], 0 }
   0x9   :  { %13 = vsyncpa [#allocation7], 0 }
   0xa   :  { %15 = vsyncpa [#allocation7 + $0x1], 0 }
   0xb   :  { %16 = vsyncpa [#allocation5], 0 }
   0xc   :  { %18 = vsyncpa [#allocation5 + $0x1], 0  ;;  %s1960_s18 = smov 0   ;;  %s1962_s19 = smov 0  }
   0xd   :  { %s1964_s20 = smov 0   ;;  %s1966_s21 = smov 0  }
   0xe   :  { %s1968_s22 = smov 0   ;;  %s1970_s23 = smov 0  }
   0xf   :  { %s1972_s24 = smov 0   ;;  %s1974_s25 = smov 0  }
  0x10   :  { %s1976_s26 = smov 0   ;;  %s1978_s27 = smov 0  }
  0x11   :  { %s1980_s28 = smov 0   ;;  %s1982_s29 = smov 0  }
  0x12   :  { %s1984_s30 = smov 0   ;;  %s1986_s6 = smov 0  }
  0x13 LB: > { %3050 = sst [smem:[#allocation14_spill]] %s1882_s22  ;;  %s2031_s7 = sadd.s32 4294967295, %s1918_s6   ;;  %s1918_s6 = sphi %s1986_s6, %s24_s6   ;;  %s1914_s30 = sphi %s1984_s30, %s3126_s30   ;;  %s1910_s29 = sphi %s1982_s29, %s3125_s29   ;;  %s1906_s28 = sphi %s1980_s28, %s3124_s28   ;;  %s1902_s27 = sphi %s1978_s27, %s3123_s27   ;;  %s1898_s26 = sphi %s1976_s26, %s3122_s26   ;;  %s1894_s25 = sphi %s1974_s25, %s3131_s25   ;;  %s1890_s24 = sphi %s1972_s24, %s3130_s24   ;;  %s1886_s23 = sphi %s1970_s23, %s3120_s23   ;;  %s1882_s22 = sphi %s1968_s22, %s3119_s22   ;;  %s1878_s21 = sphi %s1966_s21, %s3118_s21   ;;  %s1874_s20 = sphi %s1964_s20, %s3129_s20   ;;  %s1870_s19 = sphi %s1962_s19, %s3128_s19   ;;  %s1866_s18 = sphi %s1960_s18, %s3127_s18  }
  0x14   : > { %3051 = sst [smem:[#allocation15_spill]] %s1886_s23  ;;  %s33_s8 = sadd.s32 1, %s1910_s29 }
  0x15   : > { %3052 = sst [smem:[#allocation16_spill]] %s1898_s26  ;;  %p34_p0 = scmp.ge.s32.totalorder %s33_s8, 2 }
  0x16   : > { %3053 = sst [smem:[#allocation17_spill]] %s1902_s27  ;;  %s36_s9 = sadd.s32 1, %s1914_s30 }
  0x17   : > { %3054 = sst [smem:[#allocation18_spill]] %s1906_s28  ;;  %p3040_p1 = scmp.eq.s32.totalorder %s1918_s6, 0 }
  0x18   : > { %3055 = sst [smem:[#allocation19_spill]] %s1910_s29  ;;  %p3032_p2 = scmp.eq.s32.totalorder %s2031_s7, 0 }
  0x19   : > { %3056 = sst [smem:[#allocation20_spill]] %s1914_s30  ;;  %s3133_s8 = smov (%p34_p0, %s33_s8), 0 }
  0x1a   : > { %3057 = sst [smem:[#allocation21_spill]] %s3133_s8  ;;  %s3135_s9 = smov (!%p34_p0, %s36_s9), %s1914_s30 }
  0x1b   : > { %s41_s10 = ssub.s32 %s1910_s29, %s3133_s8  ;;  %s1480_s11 = sshll.u32 %s1910_s29, 3 }
  0x1c   : > { %p38_p3 = scmp.ge.s32.totalorder %s3135_s9, 2  ;;  %s1481_s12 = sadd.s32 4294967295, %s1480_s11 }
  0x1d   : > { %p70_p4 = scmp.gt.s32.totalorder %s1481_s12, 0  ;;  %s1482_s13 = sshll.u32 %s3133_s8, 3 }
  0x1e   : > { %s3137_s9 = smov (%p38_p3, %s3135_s9), 0  ;;  %s1483_s15 = sadd.s32 4294967295, %s1482_s13 }
  0x1f   : > { %3058 = sst [smem:[#allocation22_spill]] %s3137_s9  ;;  %s3139_s12 = smov (!%p70_p4, %s1481_s12), 0 }
  0x20   : > { %s2048_s14 = ssub.s32 %s1914_s30, %s3137_s9  ;;  %p74_p5 = scmp.gt.s32.totalorder %s1483_s15, 0 }
  0x21   : > { %3059 = sst [smem:[#allocation23_spill]] %s2048_s14  ;;  %s2051_s16 = sor.u32 %s41_s10, %s2048_s14 }
  0x22   : > { %p43_p6 = scmp.eq.s32.totalorder %s2051_s16, 0  ;;  %s81_s17 = sadd.s32 1, %s1886_s23 }
  0x23   : > { %s3141_s15 = smov (!%p74_p5, %s1483_s15), 0  ;;  %p88_p7 = scmp.ne.s32.totalorder %s1886_s23, %s1882_s22 }
  0x24   : > { %p94_p8 = scmp.ne.s32.totalorder %s1882_s22, %s1878_s21  ;;  %s77_s8 = ssub.s32 %s3139_s12, %s3141_s15 }
  0x25   : > { %s2059_s9 = sadd.s32 8, %s1480_s11  ;;  %s78_s5 = sor.u32 %s77_s8, %s2048_s14 }
  0x26   : > { %p2064_p9 = por %p88_p7, %p3040_p1  ;;  %p79_p10 = scmp.eq.s32.totalorder %s78_s5, 0 }
  0x27   : > { %p2070_p11 = por %p94_p8, %p3032_p2  ;;  %s2075_s21 = sadd.s32 8, %s1482_s13 }
  0x28   : > { %s2078_s11 = scalar_select %p79_p10, %s1886_s23, %s81_s17  }
  0x29   : > { %s3061_s28 = scalar_select %p2070_p11, 1, 0 }
  0x2a   : > { %3063 = sst [smem:[#allocation25_spill]] %s2078_s11  ;;  %p3031_p0 = scmp.lt.s32.totalorder %s1918_s6, 4 }
  0x2b   : > { %3062 = sst [smem:[#allocation24_spill]] %s3061_s28  ;;  %s2083_s8 = sshll.u32 %s1914_s30, 5 }
  0x2c   : > { %s253_s5 = sand.u32 1, %s1918_s6   ;;  %s255_s15 = sand.u32 1, %s1886_s23  }
  0x2d   : > { %s1492_s3 = sshll.u32 %s255_s15, 4  ;;  %s1495_s4 = sshll.u32 %s3139_s12, 1 }
  0x2e   : > { %s267_s27 = sadd.s32 %s1495_s4, %s2083_s8  ;;  %s257_s28 = scalar_lea.vmem [#allocation6], %s1492_s3 }
  0x2f   : > { %s270_s22 = sshll.u32 %s257_s28, 4  ;;  %s1497_s2 = sshll.u32 %s267_s27, 7  ;;  %s271_s22 = int_to_ptr.vmem [resolvable:$true] %s270_s22 }
  0x30   : > { %s3064_s1 = sld [smem:[#allocation28_spill]]  ;;  %p2095_p3 = pnand %p3031_p0, %p2064_p9 }
  0x31   : > { %p1503_p4 = scmp.ge.s32.totalorder %s1918_s6, 1  ;;  %p305_p5 = scmp.lt.s32.totalorder %s1918_s6, 5 }
  0x32   : > { %s2101_s15 = scalar_lea.sflag [#allocation7], %s253_s5  ;;  %p1684_p7 = pneg %p2095_p3 }
  0x33   : > { %s1695_s3 = scalar_lea.vmem %s271_s22, 256  ;;  %s1920_s4 = smov [#allocation6]  }
  0x34   : > { %p1696_p8 = scmp.ne.s32.totalorder %s271_s22, %s1695_s3  ;;  %s1700_s27 = sshll.u32 %s1920_s4, 4  ;;  %s1701_s27 = int_to_ptr.vmem [resolvable:$false] %s1700_s27 }
  0x35   : > { %p1703_p12 = scmp.lt.s32.totalorder %s271_s22, %s1701_s27 }
  0x36   : > { %s269_s17 = scalar_lea.hbm %s3064_s1, %s1497_s2  ;;  %p1698_p10 = pnand %p1696_p8, %p1684_p7 }
  0x37   : > { %s1702_s2 = scalar_lea.vmem %s1701_s27, 512 }
  0x38   : > { %p1699_p13 = pneg %p1698_p10  ;;  %p1704_p9 = scmp.lt.s32.totalorder %s1702_s2, %s1695_s3 }
  0x3a   : > { %p1705_p0 = por %p1704_p9, %p1703_p12 }
  0x3c   : > { %p1706_p2 = pnand %p1705_p0, %p1699_p13 }
  0x3e   : > { %1709 = shalt.err (!%p1706_p2)
}
  0x3f   : > { %s3033_s28 = smov 128   ;;  %s3035_s12 = smov 8  }
  0x40   : > { %1554 = dma.hbm_to_vmem [thread:$0]  (!%p2095_p3), %s269_s17, 256, %s271_s22, %s2101_s15, %s3033_s28, %s3033_s28, %s3035_s12  }
  0x41   : > { %p2115_p2 = pnand %p1503_p4, %p305_p5  ;;  %s1479_s10 = sadd.s32 4294967294, %s1918_s6  }
  0x42   : > { %s45_s5 = sadd.s32 1, %s1898_s26  ;;  %p52_p12 = scmp.ne.s32.totalorder %s1898_s26, %s1894_s25 }
  0x43   : > { %s2124_s13 = scalar_select %p43_p6, %s1898_s26, %s45_s5  }
  0x44   : > { %p58_p13 = scmp.ne.s32.totalorder %s1894_s25, %s1890_s24  ;;  %p198_p0 = scmp.eq.s32.totalorder %s2031_s7, 3 }
  0x45   : > { %3067 = sst [smem:[#allocation26_spill]] %s2124_s13  ;;  %p204_p7 = scmp.eq.s32.totalorder %s1479_s10, 3 }
  0x46   : > { %p2133_p8 = por %p3040_p1, %p52_p12  ;;  %p3069_p3 = scmp.eq.s32.totalorder %s2031_s7, 0 }
  0x47   : > { %p2143_p5 = por %p198_p0, %p52_p12  ;;  %p2147_p6 = por %p204_p7, %p58_p13 }
  0x48   : > { %p2139_p4 = por %p3069_p3, %p58_p13  ;;  %s230_s3 = sand.u32 1, %s1898_s26  }
  0x49   : > { %s3071_s16 = scalar_select %p2143_p5, 1, 0 }
  0x4a   : > { %s3072_s17 = scalar_select %p2147_p6, 1, 0 }
  0x4b   : > { %s1489_s4 = sshll.u32 %s1910_s29, 4  ;;  %s1488_s27 = sshll.u32 %s230_s3, 7 }
  0x4c   : > { %s240_s2 = sadd.s32 %s2083_s8, %s1489_s4  ;;  %s234_s5 = scalar_lea.vmem [#allocation3], %s1488_s27 }
  0x4d   : > { %s1491_s10 = sshll.u32 %s240_s2, 7  ;;  %s243_s28 = sshll.u32 %s234_s5, 4  ;;  %s244_s28 = int_to_ptr.vmem [resolvable:$true] %s243_s28 }
  0x4e   : > { %s3073_s0 = sld [smem:[#allocation27_spill]]  ;;  %p3074_p10 = scmp.lt.s32.totalorder %s1918_s6, 4 }
  0x4f   : > { %s231_s23 = scalar_lea.sflag [#allocation4], %s230_s3  ;;  %s1723_s29 = scalar_lea.vmem %s244_s28, 2048 }
  0x50   : > { %p2161_p9 = pnand %p3074_p10, %p2133_p8  ;;  %p1724_p13 = scmp.ne.s32.totalorder %s244_s28, %s1723_s29 }
  0x51   : > { %s1923_s4 = smov [#allocation3]  }
  0x52   : > { %p1712_p12 = pneg %p2161_p9  ;;  %s1728_s27 = sshll.u32 %s1923_s4, 4  ;;  %s1729_s27 = int_to_ptr.vmem [resolvable:$false] %s1728_s27 }
  0x53   : > { %s1730_s1 = scalar_lea.vmem %s1729_s27, 4096  ;;  %p1731_p3 = scmp.lt.s32.totalorder %s244_s28, %s1729_s27 }
  0x54   : > { %s242_s30 = scalar_lea.hbm %s3073_s0, %s1491_s10  ;;  %p1726_p0 = pnand %p1724_p13, %p1712_p12 }
  0x55   : > { %p1732_p1 = scmp.lt.s32.totalorder %s1730_s1, %s1723_s29 }
  0x56   : > { %p1727_p7 = pneg %p1726_p0 }
  0x57   : > { %p1733_p6 = por %p1732_p1, %p1731_p3 }
  0x59   : > { %p1734_p5 = pnand %p1733_p6, %p1727_p7 }
  0x5b   : > { %1737 = shalt.err (!%p1734_p5)
}
  0x5c   : > { %s3076_s12 = smov 8   ;;  %s3077_s22 = smov 128  }
  0x5d   : > { %s3078_s3 = sld [smem:[#allocation23_spill]]  ;;  %p3079_p1 = scmp.lt.s32.totalorder %s2059_s9, 15 }
  0x5e   : > { %1551 = dma.hbm_to_vmem [thread:$0]  (!%p2161_p9), %s242_s30, 2048, %s244_s28, %s231_s23, %s3077_s22, %s3077_s22, %s3076_s12  }
  0x5f   : > { %s3143_s9 = smov (!%p3079_p1, %s2059_s9), 15  ;;  %p3080_p8 = scmp.lt.s32.totalorder %s2075_s21, 15 }
  0x60   : > { %s117_s29 = sadd.s32 1, %s1874_s20  ;;  %p124_p5 = scmp.ne.s32.totalorder %s1874_s20, %s1870_s19 }
  0x61   : > { %s3145_s21 = smov (!%p3080_p8, %s2075_s21), 15  ;;  %p130_p6 = scmp.ne.s32.totalorder %s1870_s19, %s1866_s18 }
  0x62   : > { %s113_s13 = ssub.s32 %s3143_s9, %s3145_s21  ;;  %p3081_p10 = scmp.eq.s32.totalorder %s1918_s6, 0 }
  0x63   : > { %s114_s2 = sor.u32 %s113_s13, %s3078_s3  ;;  %p3083_p0 = scmp.eq.s32.totalorder %s2031_s7, 0 }
  0x64   : > { %p2186_p12 = por %p124_p5, %p3081_p10  ;;  %p115_p13 = scmp.eq.s32.totalorder %s114_s2, 0 }
  0x65   : > { %p2192_p7 = por %p130_p6, %p3083_p0  ;;  %s282_s30 = sand.u32 1, %s1874_s20  }
  0x66   : > { %s1500_s28 = sshll.u32 %s3143_s9, 1  ;;  %s1498_s21 = sshll.u32 %s282_s30, 4 }
  0x67   : > { %s3084_s23 = scalar_select %p2192_p7, 1, 0 }
  0x68   : > { %s2198_s5 = scalar_select %p115_p13, %s1874_s20, %s117_s29  }
  0x69   : > { %s294_s4 = sadd.s32 %s1500_s28, %s2083_s8  ;;  %s3085_s3 = sld [smem:[#allocation29_spill]] }
  0x6a   : > { %s1502_s18 = sshll.u32 %s294_s4, 7  ;;  %s284_s0 = scalar_lea.vmem [#allocation8], %s1498_s21 }
  0x6b   : > { %s297_s26 = sshll.u32 %s284_s0, 4  ;;  %p3086_p9 = scmp.lt.s32.totalorder %s1918_s6, 4  ;;  %s298_s26 = int_to_ptr.vmem [resolvable:$true] %s297_s26 }
  0x6c   : > { %s1751_s9 = scalar_lea.vmem %s298_s26, 256  ;;  %s1924_s8 = smov [#allocation8]  }
  0x6d   : > { %p2208_p3 = pnand %p3086_p9, %p2186_p12  ;;  %p1752_p8 = scmp.ne.s32.totalorder %s298_s26, %s1751_s9 }
  0x6e   : > { %s1756_s29 = sshll.u32 %s1924_s8, 4  ;;  %s1757_s29 = int_to_ptr.vmem [resolvable:$false] %s1756_s29 }
  0x6f   : > { %s296_s13 = scalar_lea.hbm %s3085_s3, %s1502_s18  ;;  %p1740_p1 = pneg %p2208_p3 }
  0x70   : > { %s1758_s30 = scalar_lea.vmem %s1757_s29, 512  ;;  %p1759_p10 = scmp.lt.s32.totalorder %s298_s26, %s1757_s29 }
  0x71   : > { %p1754_p5 = pnand %p1752_p8, %p1740_p1  ;;  %p1760_p13 = scmp.lt.s32.totalorder %s1758_s30, %s1751_s9 }
  0x73   : > { %p1755_p6 = pneg %p1754_p5  ;;  %p1761_p0 = por %p1760_p13, %p1759_p10 }
  0x75   : > { %p1762_p7 = pnand %p1761_p0, %p1755_p6 }
  0x77   : > { %1765 = shalt.err (!%p1762_p7)
}
  0x78   : > { %1557 = dma.hbm_to_vmem [thread:$0]  (!%p2208_p3), %s296_s13, 256, %s298_s26, %s2101_s15, %s3077_s22, %s3077_s22, %s3076_s12  }
  0x79   : > { %309 = sbr.rel (%p2115_p2) target bundleno = 339 (0x153), region = 40  ;;  %s2223_s0 = sand.u32 (!%p2115_p2), 1, %s1894_s25  }
  0x7a   : > { %s1504_s10 = sshll.u32 (!%p2115_p2), %s2223_s0, 7  ;;  %s312_s28 = scalar_lea.sflag (!%p2115_p2), [#allocation4], %s2223_s0 }
  0x7b   : > { %s2229_s21 = scalar_lea.vmem (!%p2115_p2), [#allocation3], %s1504_s10 }
  0x7e   : > { %1849 = dma.done.wait (%p2139_p4), %s312_s28, 2048  }
  0x7f   : > { %1851 = vsyncadd (%p2139_p4), %s312_s28, 4294965248  ;;  %s3088_s26 = sld [smem:[#allocation14_spill]]  ;;  %s320_s14 = sand.u32 1, %s2031_s7  }
  0x80   : > { %s321_s4 = scalar_lea.sflag [#allocation7], %s320_s14 }
  0x85   : > { %s322_s12 = sand.u32 1, %s3088_s26  }
  0x86   : > { %s2237_s22 = sshll.u32 %s322_s12, 4 }
  0x87   : > { %s324_s18 = scalar_lea.vmem [#allocation6], %s2237_s22 }
  0x88   : > { %1853 = dma.done.wait (%p2070_p11), %s321_s4, 256  }
  0x89   : > { %1855 = vsyncadd (%p2070_p11), %s321_s4, 4294967040  ;;  %s331_s27 = sand.u32 1, %s1870_s19   ;;  %p3090_p2 = scmp.ne.s32.totalorder %s3084_s23, 0 }
  0x8a   : > { %s2245_s11 = sshll.u32 %s331_s27, 4 }
  0x8b   : > { %s333_s1 = scalar_lea.vmem [#allocation8], %s2245_s11 }
  0x8c   : > { %1857 = dma.done.wait (%p3090_p2), %s321_s4, 256  }
  0x8d   : > { %1859 = vsyncadd (%p3090_p2), %s321_s4, 4294967040  ;;  %v382_v0 = vld [vmem:[%s2229_s21] sm:$0xff]  ;;  %v383_v1 = vld [vmem:[%s2229_s21 + $0x8] sm:$0xff]  ;;  %s2270_s7 = scalar_lea.vmem [#allocation9], %s1504_s10  ;;  %s3091_s23 = sld [smem:[#allocation17_spill]] }
  0x8e   : > { %v384_v2 = vld [vmem:[%s2229_s21 + $0x10] sm:$0xff]  ;;  %398 = vst [vmem:[#allocation2 + $0x10] sm:$0xff] %v382_v0  ;;  %399 = vst [vmem:[#allocation2 + $0x48] sm:$0xff] %v383_v1  ;;  %v385_v3 = vld [vmem:[%s2229_s21 + $0x18] sm:$0xff] }
  0x8f   : > { %400 = vst [vmem:[#allocation2 + $0x60] sm:$0xff] %v384_v2  ;;  %v386_v4 = vld [vmem:[%s2229_s21 + $0x20] sm:$0xff]  ;;  %v387_v5 = vld [vmem:[%s2229_s21 + $0x28] sm:$0xff]  ;;  %401 = vst [vmem:[#allocation2 + $0x28] sm:$0xff] %v385_v3 }
  0x90   : > { %402 = vst [vmem:[#allocation2 + $0x40] sm:$0xff] %v386_v4  ;;  %403 = vst [vmem:[#allocation2 + $0x78] sm:$0xff] %v387_v5  ;;  %v388_v6 = vld [vmem:[%s2229_s21 + $0x30] sm:$0xff]  ;;  %v389_v7 = vld [vmem:[%s2229_s21 + $0x38] sm:$0xff] }
  0x91   : > { %v390_v8 = vld [vmem:[%s2229_s21 + $0x40] sm:$0xff]  ;;  %404 = vst [vmem:[#allocation2 + $0x88] sm:$0xff] %v388_v6  ;;  %405 = vst [vmem:[#allocation2] sm:$0xff] %v389_v7  ;;  %v391_v9 = vld [vmem:[%s2229_s21 + $0x48] sm:$0xff] }
  0x92   : > { %406 = vst [vmem:[#allocation2 + $0x18] sm:$0xff] %v390_v8  ;;  %v392_v10 = vld [vmem:[%s2229_s21 + $0x50] sm:$0xff]  ;;  %v393_v11 = vld [vmem:[%s2229_s21 + $0x58] sm:$0xff]  ;;  %407 = vst [vmem:[#allocation2 + $0x8] sm:$0xff] %v391_v9 }
  0x93   : > { %408 = vst [vmem:[#allocation2 + $0x38] sm:$0xff] %v392_v10  ;;  %409 = vst [vmem:[#allocation2 + $0x50] sm:$0xff] %v393_v11  ;;  %v394_v12 = vld [vmem:[%s2229_s21 + $0x60] sm:$0xff]  ;;  %v395_v13 = vld [vmem:[%s2229_s21 + $0x68] sm:$0xff]  ;;  %p1508_p11 = scmp.ne.s32.totalorder %s3091_s23, 0 }
  0x94   : > { %v396_v14 = vld [vmem:[%s2229_s21 + $0x70] sm:$0xff]  ;;  %410 = vst [vmem:[#allocation2 + $0x68] sm:$0xff] %v394_v12  ;;  %411 = vst [vmem:[#allocation2 + $0x20] sm:$0xff] %v395_v13  ;;  %v397_v15 = vld [vmem:[%s2229_s21 + $0x78] sm:$0xff] }
  0x95   : > { %412 = vst [vmem:[#allocation2 + $0x98] sm:$0xff] %v396_v14  ;;  %413 = vst [vmem:[#allocation2 + $0x70] sm:$0xff] %v397_v15  ;;  %417 = sbr.rel (%p1508_p11) target bundleno = 156 (0x9c), region = 56 }
  0x9a   : > { %v1925_v16 = vmov 0.0  }
  0x9b   : > { %418 = vst [vmem:[#allocation2 + $0x30] sm:$0xff] %v1925_v16  ;;  %419 = vst [vmem:[#allocation2 + $0x58] sm:$0xff] %v1925_v16 }
  0x9c PF: > { %s3092_s3 = sld [smem:[#allocation17_spill]] }
  0xa2   : > { %p1509_p4 = scmp.le.s32.totalorder %s3092_s3, 0 }
  0xa4   : > { %423 = sbr.rel (%p1509_p4) target bundleno = 171 (0xab), region = 60 }
  0xa9   : > { %v424_v17 = vld [vmem:[%s324_s18] sm:$0xff]  ;;  %v425_v18 = vld [vmem:[%s324_s18 + $0x8] sm:$0xff] }
  0xaa   : > { %426 = vst [vmem:[#allocation2 + $0x30] sm:$0xff] %v424_v17  ;;  %427 = vst [vmem:[#allocation2 + $0x58] sm:$0xff] %v425_v18 }
  0xab PF: > { %s3093_s13 = sld [smem:[#allocation17_spill]] }
  0xb1   : > { %p1510_p12 = scmp.ne.s32.totalorder %s3093_s13, 1 }
  0xb3   : > { %431 = sbr.rel (%p1510_p12) target bundleno = 186 (0xba), region = 64 }
  0xb8   : > { %v1926_v19 = vmov 0.0  }
  0xb9   : > { %432 = vst [vmem:[#allocation2 + $0x80] sm:$0xff] %v1926_v19  ;;  %433 = vst [vmem:[#allocation2 + $0x90] sm:$0xff] %v1926_v19 }
  0xba PF: > { %s3094_s2 = sld [smem:[#allocation17_spill]] }
  0xc0   : > { %p1511_p7 = scmp.ge.s32.totalorder %s3094_s2, 1 }
  0xc2   : > { %437 = sbr.rel (%p1511_p7) target bundleno = 201 (0xc9), region = 68 }
  0xc7   : > { %v438_v20 = vld [vmem:[%s333_s1] sm:$0xff]  ;;  %v439_v21 = vld [vmem:[%s333_s1 + $0x8] sm:$0xff] }
  0xc8   : > { %440 = vst [vmem:[#allocation2 + $0x80] sm:$0xff] %v438_v20  ;;  %441 = vst [vmem:[#allocation2 + $0x90] sm:$0xff] %v439_v21 }
  0xc9 PF: > { %v2284_v22 = vld [vmem:[#allocation2 + $0x30] sm:$0xff]  ;;  %v2286_v23 = vld [vmem:[#allocation2 + $0x58] sm:$0xff]  ;;  %v462_v25 = vlaneseq  ;;  %v2290_v26 = vld [vmem:[#allocation2 + $0x48] sm:$0xff]  ;;  %s3095_s29 = sld [smem:[#allocation31_spill]]  ;;  %s1339_s26 = sshll.u32 %s2270_s7, 4  ;;  %s2934_s26 = int_to_ptr.vmem [resolvable:$true] %s1339_s26 }
  0xca   : > { %v2288_v24 = vld [vmem:[#allocation2 + $0x10] sm:$0xff]  ;;  %v2292_v27 = vld [vmem:[#allocation2 + $0x60] sm:$0xff]  ;;  %v750_v28 = vrot.slane %v2284_v22, 7  ;;  %v751_v29 = vrot.slane %v2286_v23, 7  ;;  %v753_v33 = vrot.slane %v2290_v26, 7  ;;  %s3096_s28 = sld [smem:[#allocation30_spill]] }
  0xcb   : > { %v2298_v31 = vshrl.u32 %v462_v25, 7  ;;  %v752_v32 = vrot.slane %v2288_v24, 7  ;;  %v754_v34 = vrot.slane %v2292_v27, 7  ;;  %v1095_v49 = vrot.slane %v2284_v22, 1  ;;  %v2342_v51 = vld [vmem:[#allocation2 + $0x28] sm:$0xff]  ;;  %s3113_s30 = sld [smem:[#allocation18_spill]] }
  0xcc   : > { %v1096_v50 = vrot.slane %v2286_v23, 1  ;;  %v1097_v53 = vrot.slane %v2288_v24, 1  ;;  %v1098_v57 = vrot.slane %v2290_v26, 1  ;;  %v1099_v58 = vrot.slane %v2292_v27, 1  ;;  %s3114_s4 = sld [smem:[#allocation32_spill]]  ;;  %s1324_s27 = scalar_lea.sflag [#allocation5], %s2223_s0 }
  0xcd   : > { %v465_v36 = vadd.s32 16, %v2298_v31  ;;  %v467_v37 = vadd.s32 32, %v2298_v31  ;;  %v487_v38 = vand.u32 15, %v2298_v31  ;;  %vm770_vm0 = vcmp.lt.s32.totalorder %v2298_v31, 1  ;;  %s1766_s11 = scalar_lea.vmem %s2934_s26, 2048  ;;  %p3115_p3 = scmp.ne.s32.totalorder %s3071_s16, 0 }
  0xce   : > { %v786_v40 = vsel %vm770_vm0, %v753_v33, %v754_v34  ;;  %v788_v45 = vsel %vm770_vm0, %v751_v29, %v752_v32  ;;  %v1100_v0 = vrot.slane %v2342_v51, 1  ;;  %vm1115_vm4 = vcmp.lt.s32.totalorder %v2298_v31, 7  ;;  %p1767_p9 = scmp.ne.s32.totalorder %s2934_s26, %s1766_s11  ;;  %s1927_s1 = smov [#allocation9]  }
  0xcf   : > { %v2296_v30 = vld [vmem:[#allocation2 + $0x90] sm:$0xff]  ;;  %v2311_v39 = vld [vmem:[%s3095_s29] ss:$0 sm:$0xff]  ;;  %v501_v43 = vand.u32 15, %v465_v36  ;;  %v515_v44 = vand.u32 15, %v467_v37  ;;  %vm730_vm1 = vcmp.gt.s32.totalorder %v487_v38, 0  ;;  %v1134_v6 = vsel %vm1115_vm4, %v1095_v49, %v1096_v50 }
  0xd0   : > { %v769_v35 = vrot.slane %v2296_v30, 7  ;;  %s3097_s15 = smov %s3096_s28  ;;  %v2324_v42 = vld [vmem:[%s3096_s28] ss:$0 sm:$0xff]  ;;  %v464_v1 = vadd.s32 8, %v2298_v31  ;;  %v466_v2 = vadd.s32 24, %v2298_v31  ;;  %v468_v3 = vadd.s32 40, %v2298_v31  ;;  %p1768_p1 = pnand %p1767_p9, %p3115_p3 }
  0xd1   : > { %v2333_v46 = vld [vmem:[%s3097_s15 + $0x4] ss:$0 sm:$0xff]  ;;  %v2338_v48 = vld [vmem:[%s3097_s15 + $0x8] ss:$0 sm:$0xff]  ;;  %vm732_vm2 = vcmp.gt.s32.totalorder %v501_v43, 0  ;;  %vm734_vm3 = vcmp.gt.s32.totalorder %v515_v44, 0  ;;  %v2395_v9 = vsel %vm770_vm0, %v752_v32, %v753_v33  ;;  %v2403_v12 = vsel %vm1115_vm4, %v1099_v58, %v1100_v0 }
  0xd2   : > { %v790_v41 = vsel %vm770_vm0, %v769_v35, %v750_v28  ;;  %v2346_v54 = vsel %vm732_vm2, %v788_v45, 0.0  ;;  %v2348_v55 = vsel %vm734_vm3, %v786_v40, 0.0  ;;  %v2353_v56 = vld [vmem:[%s3097_s15 + $0x1] ss:$0 sm:$0xff]  ;;  %v2365_v62 = vld [vmem:[%s3097_s15 + $0x5] ss:$0 sm:$0xff]  ;;  %v2407_v15 = vsel %vm1115_vm4, %v1097_v53, %v1098_v57  ;;  %p1769_p8 = pneg %p1768_p1 }
  0xd3   : > { %v831_v47 = vsel %vm730_vm1, %v790_v41, 0.0  ;;  %v894_v60 = vmul.f32 %v2333_v46, %v2346_v54  ;;  %v932_v61 = vmul.f32 %v2338_v48, %v2348_v55  ;;  %v2370_v63 = vld [vmem:[%s3097_s15 + $0x9] ss:$0 sm:$0xff]  ;;  %v969_v5 = vmul.f32 %v2353_v56, %v2284_v22  ;;  %v2386_v7 = vld [vmem:[%s3097_s15 + $0x2] ss:$0 sm:$0xff]  ;;  %s3112_s29 = sld [smem:[#allocation17_spill]] }
  0xd4   : > { %v856_v52 = vmul.f32 %v2324_v42, %v831_v47  ;;  %v2391_v8 = vld [vmem:[%s3097_s15 + $0x6] ss:$0 sm:$0xff]  ;;  %v1006_v10 = vmul.f32 %v2365_v62, %v2288_v24  ;;  %v1043_v11 = vmul.f32 %v2370_v63, %v2292_v27  ;;  %v494_v13 = vand.u32 15, %v464_v1  ;;  %v2412_v16 = vld [vmem:[%s3097_s15 + $0xa] ss:$0 sm:$0xff]  ;;  %s1530_s28 = sshll.u32 %s3113_s30, 5 }
  0xd5   : > { %v508_v17 = vand.u32 15, %v466_v2  ;;  %v755_v18 = vrot.slane %v2342_v51, 7  ;;  %v1201_v19 = vmul.f32 %v2386_v7, %v1134_v6  ;;  %v1238_v20 = vmul.f32 %v2391_v8, %v2407_v15  ;;  %v2424_v33 = vld [vmem:[#allocation2 + $0x40] sm:$0xff]  ;;  %s1770_s23 = sshll.u32 %s1927_s1, 4  ;;  %s1771_s23 = int_to_ptr.vmem [resolvable:$false] %s1770_s23 }
  0xd6   : > { %v872_v59 = vadd.f32 %v2311_v39, %v856_v52  ;;  %v522_v21 = vand.u32 15, %v468_v3  ;;  %v789_v25 = vsel %vm770_vm0, %v750_v28, %v751_v29  ;;  %v895_v38 = vmul.f32 %v2333_v46, %v2395_v9  ;;  %s1772_s3 = scalar_lea.vmem %s1771_s23, 4096  ;;  %p1773_p5 = scmp.lt.s32.totalorder %s2934_s26, %s1771_s23 }
  0xd7   : > { %v2428_v36 = vsel %vm770_vm0, %v754_v34, %v755_v18  ;;  %v857_v37 = vmul.f32 %v2324_v42, %v789_v25  ;;  %v1275_v40 = vmul.f32 %v2412_v16, %v2403_v12  ;;  %v970_v28 = vmul.f32 %v2353_v56, %v2286_v23  ;;  %p1774_p6 = scmp.lt.s32.totalorder %s1772_s3, %s1766_s11 }
  0xd8   : > { %v910_v4 = vadd.f32 %v894_v60, %v872_v59  ;;  %v933_v41 = vmul.f32 %v2338_v48, %v2428_v36  ;;  %vm2439_vm5 = vcmp.lt.s32.totalorder %v494_v13, 15  ;;  %vm2444_vm6 = vcmp.lt.s32.totalorder %v508_v17, 15  ;;  %v2474_v17 = vld [vmem:[#allocation2 + $0x78] sm:$0xff] }
  0xd9   : > { %v873_v43 = vadd.f32 %v2311_v39, %v857_v37  ;;  %v1101_v45 = vrot.slane %v2424_v33, 1  ;;  %v1131_v47 = vsel %vm1115_vm4, %v1098_v57, %v1099_v58  ;;  %v1133_v52 = vsel %vm1115_vm4, %v1096_v50, %v1097_v53  ;;  %s1529_s10 = sshll.u32 %s3112_s29, 4  ;;  %p1775_p10 = por %p1774_p6, %p1773_p5 }
  0xda   : > { %v948_v14 = vadd.f32 %v932_v61, %v910_v4  ;;  %v469_v23 = vadd.s32 48, %v2298_v31  ;;  %v756_v59 = vrot.slane %v2424_v33, 7  ;;  %vm1080_vm7 = vcmp.lt.s32.totalorder %v522_v21, 15  ;;  %s1336_s21 = sadd.s32 %s1530_s28, %s1529_s10 }
  0xdb   : > { %v911_v61 = vadd.f32 %v895_v38, %v873_v43  ;;  %v1129_v1 = vsel %vm1115_vm4, %v1100_v0, %v1101_v45  ;;  %v1007_v2 = vmul.f32 %v2365_v62, %v2290_v26  ;;  %v1044_v3 = vmul.f32 %v2370_v63, %v2342_v51  ;;  %s1531_s14 = sshll.u32 %s1336_s21, 7  ;;  %p1776_p13 = pnand %p1775_p10, %p1769_p8 }
  0xdc   : > { %v985_v32 = vadd.f32 %v969_v5, %v948_v14  ;;  %v1177_v57 = vsel %vm2439_vm5, %v1133_v52, 0.0  ;;  %v529_v50 = vand.u32 15, %v469_v23  ;;  %v1179_v4 = vsel %vm2444_vm6, %v1131_v47, 0.0  ;;  %s2939_s18 = scalar_lea.hbm %s3114_s4, %s1531_s14 }
  0xdd   : > { %v949_v58 = vadd.f32 %v933_v41, %v911_v61  ;;  %v784_v5 = vsel %vm770_vm0, %v755_v18, %v756_v59  ;;  %v2467_v6 = vsel %vm1080_vm7, %v1129_v1, 0.0  ;;  %v858_v0 = vmul.f32 %v2324_v42, %v2346_v54 }
  0xde   : > { %v1022_v34 = vadd.f32 %v1006_v10, %v985_v32  ;;  %vm736_vm8 = vcmp.gt.s32.totalorder %v529_v50, 0  ;;  %v896_v10 = vmul.f32 %v2333_v46, %v2348_v55  ;;  %v1202_v14 = vmul.f32 %v2386_v7, %v1177_v57 }
  0xdf   : > { %v986_v13 = vadd.f32 %v970_v28, %v949_v58  ;;  %v1239_v18 = vmul.f32 %v2391_v8, %v1179_v4  ;;  %v1276_v21 = vmul.f32 %v2412_v16, %v2467_v6  ;;  %v874_v25 = vadd.f32 %v2311_v39, %v858_v0 }
  0xe0   : > { %v1059_v60 = vadd.f32 %v1043_v11, %v1022_v34  ;;  %v971_v37 = vmul.f32 %v2353_v56, %v2288_v24  ;;  %v1102_v38 = vrot.slane %v2474_v17, 1  ;;  %v1008_v28 = vmul.f32 %v2365_v62, %v2292_v27 }
  0xe1   : > { %v912_v41 = vadd.f32 %v896_v10, %v874_v25  ;;  %v470_v29 = vadd.s32 56, %v2298_v31  ;;  %v757_v34 = vrot.slane %v2474_v17, 7  ;;  %v1045_v44 = vmul.f32 %v2370_v63, %v2424_v33 }
  0xe2   : > { %v1217_v53 = vadd.f32 %v1201_v19, %v1059_v60  ;;  %v2476_v19 = vsel %vm736_vm8, %v784_v5, 0.0  ;;  %v897_v24 = vmul.f32 %v2333_v46, %v2428_v36  ;;  %v1203_v52 = vmul.f32 %v2386_v7, %v2407_v15 }
  0xe3   : > { %v934_v54 = vmul.f32 %v2338_v48, %v2476_v19  ;;  %v536_v23 = vand.u32 15, %v470_v29  ;;  %v2502_v60 = vsel %vm770_vm0, %v756_v59, %v757_v34  ;;  %v2506_v1 = vsel %vm1115_vm4, %v1101_v45, %v1102_v38 }
  0xe4   : > { %v1254_v11 = vadd.f32 %v1238_v20, %v1217_v53  ;;  %v1023_v20 = vadd.f32 %v1007_v2, %v986_v13  ;;  %v2508_v2 = vld [vmem:[#allocation2 + $0x88] sm:$0xff]  ;;  %v1240_v15 = vmul.f32 %v2391_v8, %v2403_v12  ;;  %v1277_v59 = vmul.f32 %v2412_v16, %v2506_v1 }
  0xe5   : > { %v950_v47 = vadd.f32 %v934_v54, %v912_v41  ;;  %v1103_v50 = vrot.slane %v2508_v2, 1  ;;  %v972_v58 = vmul.f32 %v2353_v56, %v2290_v26  ;;  %v1009_v5 = vmul.f32 %v2365_v62, %v2342_v51 }
  0xe6   : > { %v1291_v32 = vadd.f32 %v1275_v40, %v1254_v11  ;;  %v1060_v43 = vadd.f32 %v1044_v3, %v1023_v20  ;;  %v859_v40 = vmul.f32 %v2324_v42, %v2395_v9  ;;  %v935_v3 = vmul.f32 %v2338_v48, %v2502_v60 }
  0xe7   : > { %v987_v57 = vadd.f32 %v971_v37, %v950_v47  ;;  %vm2522_vm9 = vcmp.lt.s32.totalorder %v536_v23, 15  ;;  %v471_v11 = vadd.s32 64, %v2298_v31  ;;  %v758_v13 = vrot.slane %v2508_v2, 7 }
  0xe8   : > { %1307 = vst [vmem:[%s2270_s7] sm:$0xff] %v1291_v32  ;;  %v1218_v61 = vadd.f32 %v1202_v14, %v1060_v43  ;;  %v875_v9 = vadd.f32 %v2311_v39, %v859_v40  ;;  %v860_v26 = vmul.f32 %v2324_v42, %v2348_v55  ;;  %v1046_v32 = vmul.f32 %v2370_v63, %v2474_v17 }
  0xe9   : > { %v1024_v0 = vadd.f32 %v1008_v28, %v987_v57  ;;  %v543_v20 = vand.u32 15, %v471_v11  ;;  %v782_v37 = vsel %vm770_vm0, %v757_v34, %v758_v13  ;;  %v1204_v28 = vmul.f32 %v2386_v7, %v1179_v4 }
  0xea   : > { %v1255_v53 = vadd.f32 %v1239_v18, %v1218_v61  ;;  %v913_v45 = vadd.f32 %v897_v24, %v875_v9  ;;  %v1127_v18 = vsel %vm1115_vm4, %v1102_v38, %v1103_v50  ;;  %v898_v38 = vmul.f32 %v2333_v46, %v2476_v19 }
  0xeb   : > { %v1061_v54 = vadd.f32 %v1045_v44, %v1024_v0  ;;  %v2543_v55 = vsel %vm2522_vm9, %v1127_v18, 0.0  ;;  %v1241_v43 = vmul.f32 %v2391_v8, %v2467_v6  ;;  %v2547_v44 = vld [vmem:[#allocation2] sm:$0xff]  ;;  %vm738_vm10 = vcmp.gt.s32.totalorder %v543_v20, 0 }
  0xec   : > { %v1292_v14 = vadd.f32 %v1276_v21, %v1255_v53  ;;  %v951_v25 = vadd.f32 %v935_v3, %v913_v45  ;;  %v876_v21 = vadd.f32 %v2311_v39, %v860_v26  ;;  %v1278_v4 = vmul.f32 %v2412_v16, %v2543_v55 }
  0xed   : > { %v1219_v29 = vadd.f32 %v1203_v52, %v1061_v54  ;;  %v2551_v40 = vsel %vm738_vm10, %v782_v37, 0.0  ;;  %v973_v23 = vmul.f32 %v2353_v56, %v2292_v27  ;;  %v1010_v61 = vmul.f32 %v2365_v62, %v2424_v33 }
  0xee   : > { %1308 = vst [vmem:[%s2270_s7 + $0x8] sm:$0xff] %v1292_v14  ;;  %v988_v41 = vadd.f32 %v972_v58, %v951_v25  ;;  %v914_v24 = vadd.f32 %v898_v38, %v876_v21  ;;  %v936_v52 = vmul.f32 %v2338_v48, %v2551_v40  ;;  %v1104_v3 = vrot.slane %v2547_v44, 1  ;;  %v2575_v25 = vld [vmem:[#allocation2 + $0x18] sm:$0xff] }
  0xef   : > { %v1256_v47 = vadd.f32 %v1240_v15, %v1219_v29  ;;  %v472_v57 = vadd.s32 72, %v2298_v31  ;;  %v759_v53 = vrot.slane %v2547_v44, 7  ;;  %v1047_v15 = vmul.f32 %v2370_v63, %v2508_v2 }
  0xf0   : > { %v1025_v34 = vadd.f32 %v1009_v5, %v988_v41  ;;  %v952_v58 = vadd.f32 %v936_v52, %v914_v24  ;;  %v861_v5 = vmul.f32 %v2324_v42, %v2428_v36  ;;  %v899_v11 = vmul.f32 %v2333_v46, %v2502_v60 }
  0xf1   : > { %v1293_v45 = vadd.f32 %v1277_v59, %v1256_v47  ;;  %v550_v27 = vand.u32 15, %v472_v57  ;;  %v2568_v10 = vsel %vm770_vm0, %v758_v13, %v759_v53  ;;  %v1205_v59 = vmul.f32 %v2386_v7, %v2403_v12 }
  0xf2   : > { %v1062_v9 = vadd.f32 %v1046_v32, %v1025_v34  ;;  %v989_v14 = vadd.f32 %v973_v23, %v952_v58  ;;  %v877_v18 = vadd.f32 %v2311_v39, %v861_v5  ;;  %v937_v36 = vmul.f32 %v2338_v48, %v2568_v10 }
  0xf3   : > { %1309 = vst [vmem:[%s2270_s7 + $0x10] sm:$0xff] %v1293_v45  ;;  %v2582_v13 = vsel %vm1115_vm4, %v1103_v50, %v1104_v3  ;;  %v1242_v54 = vmul.f32 %v2391_v8, %v2506_v1  ;;  %v974_v32 = vmul.f32 %v2353_v56, %v2342_v51  ;;  %v1011_v37 = vmul.f32 %v2365_v62, %v2474_v17  ;;  %v2619_v45 = vld [vmem:[#allocation2 + $0x8] sm:$0xff] }
  0xf4   : > { %v1220_v0 = vadd.f32 %v1204_v28, %v1062_v9  ;;  %v1026_v12 = vadd.f32 %v1010_v61, %v989_v14  ;;  %v915_v20 = vadd.f32 %v899_v11, %v877_v18  ;;  %v1105_v41 = vrot.slane %v2575_v25, 1 }
  0xf5   : > { %vm2591_vm11 = vcmp.lt.s32.totalorder %v550_v27, 15  ;;  %v473_v50 = vadd.s32 80, %v2298_v31  ;;  %v760_v38 = vrot.slane %v2575_v25, 7  ;;  %v862_v34 = vmul.f32 %v2324_v42, %v2476_v19 }
  0xf6   : > { %v1257_v26 = vadd.f32 %v1241_v43, %v1220_v0  ;;  %v1063_v29 = vadd.f32 %v1047_v15, %v1026_v12  ;;  %v953_v43 = vadd.f32 %v937_v36, %v915_v20  ;;  %v1125_v51 = vsel %vm1115_vm4, %v1104_v3, %v1105_v41 }
  0xf7   : > { %v557_v24 = vand.u32 15, %v473_v50  ;;  %v780_v47 = vsel %vm770_vm0, %v759_v53, %v760_v38  ;;  %v900_v52 = vmul.f32 %v2333_v46, %v2551_v40  ;;  %v1048_v9 = vmul.f32 %v2370_v63, %v2547_v44 }
  0xf8   : > { %v1294_v28 = vadd.f32 %v1278_v4, %v1257_v26  ;;  %v1279_v4 = vmul.f32 %v2412_v16, %v2582_v13  ;;  %v1221_v23 = vadd.f32 %v1205_v59, %v1063_v29  ;;  %v990_v61 = vadd.f32 %v974_v32, %v953_v43  ;;  %v2647_v43 = vld [vmem:[#allocation2 + $0x38] sm:$0xff] }
  0xf9   : > { %v878_v3 = vadd.f32 %v2311_v39, %v862_v34  ;;  %v2613_v19 = vsel %vm2591_vm11, %v1125_v51, 0.0  ;;  %v1206_v57 = vmul.f32 %v2386_v7, %v2467_v6  ;;  %v1243_v53 = vmul.f32 %v2391_v8, %v2543_v55 }
  0xfa   : > { %1310 = vst [vmem:[%s2270_s7 + $0x18] sm:$0xff] %v1294_v28  ;;  %vm740_vm12 = vcmp.gt.s32.totalorder %v557_v24, 0  ;;  %v1258_v58 = vadd.f32 %v1242_v54, %v1221_v23  ;;  %v1027_v15 = vadd.f32 %v1011_v37, %v990_v61  ;;  %v1280_v27 = vmul.f32 %v2412_v16, %v2613_v19 }
  0xfb   : > { %v2621_v5 = vsel %vm740_vm12, %v780_v47, 0.0  ;;  %v916_v0 = vadd.f32 %v900_v52, %v878_v3  ;;  %v975_v6 = vmul.f32 %v2353_v56, %v2424_v33  ;;  %v1106_v14 = vrot.slane %v2619_v45, 1 }
  0xfc   : > { %v938_v11 = vmul.f32 %v2338_v48, %v2621_v5  ;;  %v1295_v59 = vadd.f32 %v1279_v4, %v1258_v58  ;;  %v1064_v18 = vadd.f32 %v1048_v9, %v1027_v15  ;;  %v474_v36 = vadd.s32 88, %v2298_v31 }
  0xfd   : > { %v761_v26 = vrot.slane %v2619_v45, 7  ;;  %v1012_v32 = vmul.f32 %v2365_v62, %v2508_v2  ;;  %v863_v12 = vmul.f32 %v2324_v42, %v2502_v60  ;;  %v901_v20 = vmul.f32 %v2333_v46, %v2568_v10 }
  0xfe   : > { %v954_v54 = vadd.f32 %v938_v11, %v916_v0  ;;  %1311 = vst [vmem:[%s2270_s7 + $0x20] sm:$0xff] %v1295_v59  ;;  %v1222_v33 = vadd.f32 %v1206_v57, %v1064_v18  ;;  %v1049_v37 = vmul.f32 %v2370_v63, %v2575_v25  ;;  %v564_v28 = vand.u32 15, %v474_v36 }
  0xff   : > { %v2643_v21 = vsel %vm770_vm0, %v760_v38, %v761_v26  ;;  %v1207_v29 = vmul.f32 %v2386_v7, %v2506_v1  ;;  %v879_v60 = vadd.f32 %v2311_v39, %v863_v12  ;;  %v2654_v4 = vsel %vm1115_vm4, %v1105_v41, %v1106_v14 }
 0x100   : > { %v991_v50 = vadd.f32 %v975_v6, %v954_v54  ;;  %v939_v51 = vmul.f32 %v2338_v48, %v2643_v21  ;;  %v1259_v34 = vadd.f32 %v1243_v53, %v1222_v33  ;;  %v1244_v38 = vmul.f32 %v2391_v8, %v2582_v13  ;;  %v2691_v54 = vld [vmem:[#allocation2 + $0x50] sm:$0xff] }
 0x101   : > { %v976_v24 = vmul.f32 %v2353_v56, %v2474_v17  ;;  %v917_v47 = vadd.f32 %v901_v20, %v879_v60  ;;  %v1013_v52 = vmul.f32 %v2365_v62, %v2547_v44  ;;  %v1107_v23 = vrot.slane %v2647_v43, 1 }
 0x102   : > { %v1028_v1 = vadd.f32 %v1012_v32, %v991_v50  ;;  %v1296_v61 = vadd.f32 %v1280_v27, %v1259_v34  ;;  %vm2663_vm13 = vcmp.lt.s32.totalorder %v564_v28, 15  ;;  %v475_v41 = vadd.s32 96, %v2298_v31 }
 0x103   : > { %v762_v3 = vrot.slane %v2647_v43, 7  ;;  %v955_v53 = vadd.f32 %v939_v51, %v917_v47  ;;  %v1123_v17 = vsel %vm1115_vm4, %v1106_v14, %v1107_v23  ;;  %v864_v58 = vmul.f32 %v2324_v42, %v2551_v40 }
 0x104   : > { %v1065_v57 = vadd.f32 %v1049_v37, %v1028_v1  ;;  %1312 = vst [vmem:[%s2270_s7 + $0x28] sm:$0xff] %v1296_v61  ;;  %v1281_v15 = vmul.f32 %v2412_v16, %v2654_v4  ;;  %v571_v0 = vand.u32 15, %v475_v41  ;;  %v902_v11 = vmul.f32 %v2333_v46, %v2621_v5 }
 0x105   : > { %v778_v27 = vsel %vm770_vm0, %v761_v26, %v762_v3  ;;  %v992_v59 = vadd.f32 %v976_v24, %v955_v53  ;;  %v1050_v18 = vmul.f32 %v2370_v63, %v2619_v45  ;;  %v880_v14 = vadd.f32 %v2311_v39, %v864_v58 }
 0x106   : > { %v1223_v6 = vadd.f32 %v1207_v29, %v1065_v57  ;;  %v2685_v40 = vsel %vm2663_vm13, %v1123_v17, 0.0  ;;  %v1208_v36 = vmul.f32 %v2386_v7, %v2543_v55  ;;  %v1245_v26 = vmul.f32 %v2391_v8, %v2613_v19 }
 0x107   : > { %vm742_vm14 = vcmp.gt.s32.totalorder %v571_v0, 0  ;;  %v1029_v12 = vadd.f32 %v1013_v52, %v992_v59  ;;  %v918_v33 = vadd.f32 %v902_v11, %v880_v14  ;;  %v1282_v37 = vmul.f32 %v2412_v16, %v2685_v40 }
 0x108   : > { %v1260_v32 = vadd.f32 %v1244_v38, %v1223_v6  ;;  %v2693_v20 = vsel %vm742_vm14, %v778_v27, 0.0  ;;  %v977_v55 = vmul.f32 %v2353_v56, %v2508_v2  ;;  %v1108_v50 = vrot.slane %v2691_v54, 1 }
 0x109   : > { %v940_v28 = vmul.f32 %v2338_v48, %v2693_v20  ;;  %v1066_v60 = vadd.f32 %v1050_v18, %v1029_v12  ;;  %v476_v51 = vadd.s32 104, %v2298_v31  ;;  %v763_v34 = vrot.slane %v2691_v54, 7 }
 0x10a   : > { %v1297_v29 = vadd.f32 %v1281_v15, %v1260_v32  ;;  %v1014_v24 = vmul.f32 %v2365_v62, %v2575_v25  ;;  %v865_v1 = vmul.f32 %v2324_v42, %v2568_v10  ;;  %v903_v47 = vmul.f32 %v2333_v46, %v2643_v21  ;;  %v2723_v10 = vld [vmem:[#allocation2 + $0x68] sm:$0xff] }
 0x10b   : > { %v956_v38 = vadd.f32 %v940_v28, %v918_v33  ;;  %v1224_v2 = vadd.f32 %v1208_v36, %v1066_v60  ;;  %v1051_v52 = vmul.f32 %v2370_v63, %v2647_v43  ;;  %v1209_v61 = vmul.f32 %v2386_v7, %v2582_v13 }
 0x10c   : > { %1313 = vst [vmem:[%s2270_s7 + $0x30] sm:$0xff] %v1297_v29  ;;  %v2717_v9 = vsel %vm770_vm0, %v762_v3, %v763_v34  ;;  %v2721_v57 = vsel %vm1115_vm4, %v1107_v23, %v1108_v50  ;;  %v881_v53 = vadd.f32 %v2311_v39, %v865_v1  ;;  %v1246_v13 = vmul.f32 %v2391_v8, %v2654_v4 }
 0x10d   : > { %v993_v41 = vadd.f32 %v977_v55, %v956_v38  ;;  %v941_v17 = vmul.f32 %v2338_v48, %v2717_v9  ;;  %v1261_v58 = vadd.f32 %v1245_v26, %v1224_v2  ;;  %v1283_v3 = vmul.f32 %v2412_v16, %v2721_v57 }
 0x10e   : > { %v578_v15 = vand.u32 15, %v476_v51  ;;  %v919_v27 = vadd.f32 %v903_v47, %v881_v53  ;;  %v978_v23 = vmul.f32 %v2353_v56, %v2547_v44  ;;  %v1109_v11 = vrot.slane %v2723_v10, 1 }
 0x10f   : > { %v1030_v0 = vadd.f32 %v1014_v24, %v993_v41  ;;  %v1298_v6 = vadd.f32 %v1282_v37, %v1261_v58  ;;  %v1015_v59 = vmul.f32 %v2365_v62, %v2619_v45  ;;  %v477_v18 = vadd.s32 112, %v2298_v31  ;;  %v2759_v24 = vld [vmem:[#allocation2 + $0x20] sm:$0xff] }
 0x110   : > { %v764_v14 = vrot.slane %v2723_v10, 7  ;;  %v957_v26 = vadd.f32 %v941_v17, %v919_v27  ;;  %v1052_v32 = vmul.f32 %v2370_v63, %v2691_v54  ;;  %v866_v12 = vmul.f32 %v2324_v42, %v2621_v5  ;;  %v2778_v27 = vld [vmem:[#allocation2 + $0x98] sm:$0xff] }
 0x111   : > { %v1067_v36 = vadd.f32 %v1051_v52, %v1030_v0  ;;  %1314 = vst [vmem:[%s2270_s7 + $0x38] sm:$0xff] %v1298_v6  ;;  %vm2744_vm15 = vcmp.lt.s32.totalorder %v578_v15, 15  ;;  %v585_v33 = vand.u32 15, %v477_v18  ;;  %v904_v28 = vmul.f32 %v2333_v46, %v2693_v20 }
 0x112   : > { %v776_v37 = vsel %vm770_vm0, %v763_v34, %v764_v14  ;;  %v994_v29 = vadd.f32 %v978_v23, %v957_v26  ;;  %v1121_v60 = vsel %vm1115_vm4, %v1108_v50, %v1109_v11  ;;  %v882_v51 = vadd.f32 %v2311_v39, %v866_v12 }
 0x113   : > { %v1225_v55 = vadd.f32 %v1209_v61, %v1067_v36  ;;  %v1210_v5 = vmul.f32 %v2386_v7, %v2613_v19  ;;  %v1247_v38 = vmul.f32 %v2391_v8, %v2685_v40  ;;  %vm744_vm1 = vcmp.gt.s32.totalorder %v585_v33, 0 }
 0x114   : > { %v1031_v1 = vadd.f32 %v1015_v59, %v994_v29  ;;  %v2761_v47 = vsel %vm744_vm1, %v776_v37, 0.0  ;;  %v920_v2 = vadd.f32 %v904_v28, %v882_v51  ;;  %v2765_v50 = vsel %vm2744_vm15, %v1121_v60, 0.0 }
 0x115   : > { %v1262_v34 = vadd.f32 %v1246_v13, %v1225_v55  ;;  %v942_v52 = vmul.f32 %v2338_v48, %v2761_v47  ;;  %v979_v19 = vmul.f32 %v2353_v56, %v2575_v25  ;;  %v1110_v61 = vrot.slane %v2759_v24, 1 }
 0x116   : > { %v1068_v53 = vadd.f32 %v1052_v32, %v1031_v1  ;;  %v478_v17 = vadd.s32 120, %v2298_v31  ;;  %v765_v58 = vrot.slane %v2759_v24, 7  ;;  %v1284_v13 = vmul.f32 %v2412_v16, %v2765_v50  ;;  %v2818_v1 = vld [vmem:[#allocation2 + $0x70] sm:$0xff] }
 0x117   : > { %v1299_v41 = vadd.f32 %v1283_v3, %v1262_v34  ;;  %v958_v15 = vadd.f32 %v942_v52, %v920_v2  ;;  %v1016_v0 = vmul.f32 %v2365_v62, %v2647_v43  ;;  %v867_v25 = vmul.f32 %v2324_v42, %v2643_v21 }
 0x118   : > { %v1226_v23 = vadd.f32 %v1210_v5, %v1068_v53  ;;  %v1053_v3 = vmul.f32 %v2370_v63, %v2723_v10  ;;  %v1211_v6 = vmul.f32 %v2386_v7, %v2654_v4  ;;  %v2789_v59 = vsel %vm770_vm0, %v764_v14, %v765_v58 }
 0x119   : > { %1315 = vst [vmem:[%s2270_s7 + $0x40] sm:$0xff] %v1299_v41  ;;  %v995_v18 = vadd.f32 %v979_v19, %v958_v15  ;;  %v883_v36 = vadd.f32 %v2311_v39, %v867_v25  ;;  %v905_v26 = vmul.f32 %v2333_v46, %v2717_v9  ;;  %v943_v21 = vmul.f32 %v2338_v48, %v2789_v59 }
 0x11a   : > { %v1263_v32 = vadd.f32 %v1247_v38, %v1226_v23  ;;  %v2798_v12 = vsel %vm1115_vm4, %v1109_v11, %v1110_v61  ;;  %v592_v4 = vand.u32 15, %v478_v17  ;;  %v766_v44 = vrot.slane %v2778_v27, 7 }
 0x11b   : > { %v1032_v14 = vadd.f32 %v1016_v0, %v995_v18  ;;  %v921_v33 = vadd.f32 %v905_v26, %v883_v36  ;;  %v980_v37 = vmul.f32 %v2353_v56, %v2619_v45  ;;  %v1111_v28 = vrot.slane %v2778_v27, 1 }
 0x11c   : > { %v1300_v55 = vadd.f32 %v1284_v13, %v1263_v32  ;;  %v1248_v29 = vmul.f32 %v2391_v8, %v2721_v57  ;;  %v1285_v60 = vmul.f32 %v2412_v16, %v2798_v12  ;;  %v479_v11 = vadd.s32 128, %v2298_v31 }
 0x11d   : > { %v1069_v51 = vadd.f32 %v1053_v3, %v1032_v14  ;;  %v959_v5 = vadd.f32 %v943_v21, %v921_v33  ;;  %v1017_v38 = vmul.f32 %v2365_v62, %v2691_v54  ;;  %v1054_v34 = vmul.f32 %v2370_v63, %v2759_v24  ;;  %v2846_v33 = vld [vmem:[#allocation2 + $0x80] sm:$0xff] }
 0x11e   : > { %1316 = vst [vmem:[%s2270_s7 + $0x48] sm:$0xff] %v1300_v55  ;;  %vm2814_vm2 = vcmp.lt.s32.totalorder %v592_v4, 15  ;;  %v599_v2 = vand.u32 15, %v479_v11  ;;  %v774_v52 = vsel %vm770_vm0, %v765_v58, %v766_v44  ;;  %v868_v19 = vmul.f32 %v2324_v42, %v2693_v20 }
 0x11f   : > { %v1227_v41 = vadd.f32 %v1211_v6, %v1069_v51  ;;  %v996_v53 = vadd.f32 %v980_v37, %v959_v5  ;;  %v1119_v17 = vsel %vm1115_vm4, %v1110_v61, %v1111_v28  ;;  %v906_v13 = vmul.f32 %v2333_v46, %v2761_v47 }
 0x120   : > { %v1212_v15 = vmul.f32 %v2386_v7, %v2685_v40  ;;  %vm746_vm3 = vcmp.gt.s32.totalorder %v599_v2, 0  ;;  %v884_v0 = vadd.f32 %v2311_v39, %v868_v19  ;;  %v767_v58 = vrot.slane %v2818_v1, 7 }
 0x121   : > { %v1264_v25 = vadd.f32 %v1248_v29, %v1227_v41  ;;  %v1033_v23 = vadd.f32 %v1017_v38, %v996_v53  ;;  %v847_v20 = vsel %vm746_vm3, %v774_v52, 0.0  ;;  %v2834_v3 = vsel %vm2814_vm2, %v1119_v17, 0.0 }
 0x122   : > { %v922_v61 = vadd.f32 %v906_v13, %v884_v0  ;;  %v944_v6 = vmul.f32 %v2338_v48, %v847_v20  ;;  %v981_v18 = vmul.f32 %v2353_v56, %v2647_v43  ;;  %v1249_v26 = vmul.f32 %v2391_v8, %v2765_v50 }
 0x123   : > { %v1301_v40 = vadd.f32 %v1285_v60, %v1264_v25  ;;  %v1070_v36 = vadd.f32 %v1054_v34, %v1033_v23  ;;  %v1286_v21 = vmul.f32 %v2412_v16, %v2834_v3  ;;  %v1018_v4 = vmul.f32 %v2365_v62, %v2723_v10 }
 0x124   : > { %v960_v32 = vadd.f32 %v944_v6, %v922_v61  ;;  %v1112_v14 = vrot.slane %v2818_v1, 1  ;;  %v480_v37 = vadd.s32 136, %v2298_v31  ;;  %v1055_v55 = vmul.f32 %v2370_v63, %v2778_v27 }
 0x125   : > { %1317 = vst [vmem:[%s2270_s7 + $0x50] sm:$0xff] %v1301_v40  ;;  %v1228_v43 = vadd.f32 %v1212_v15, %v1070_v36  ;;  %v1213_v29 = vmul.f32 %v2386_v7, %v2721_v57  ;;  %v869_v60 = vmul.f32 %v2324_v42, %v2717_v9  ;;  %v1250_v51 = vmul.f32 %v2391_v8, %v2798_v12 }
 0x126   : > { %v997_v11 = vadd.f32 %v981_v18, %v960_v32  ;;  %v773_v5 = vsel %vm770_vm0, %v766_v44, %v767_v58  ;;  %v907_v38 = vmul.f32 %v2333_v46, %v2789_v59  ;;  %v768_v45 = vrot.slane %v2846_v33, 7 }
 0x127   : > { %v1265_v34 = vadd.f32 %v1249_v26, %v1228_v43  ;;  %v885_v2 = vadd.f32 %v2311_v39, %v869_v60  ;;  %v945_v57 = vmul.f32 %v2338_v48, %v773_v5  ;;  %v1118_v9 = vsel %vm1115_vm4, %v1111_v28, %v1112_v14 }
 0x128   : > { %v1034_v52 = vadd.f32 %v1018_v4, %v997_v11  ;;  %v606_v19 = vand.u32 15, %v480_v37  ;;  %v1113_v41 = vrot.slane %v2846_v33, 1  ;;  %v982_v17 = vmul.f32 %v2353_v56, %v2691_v54 }
 0x129   : > { %v1302_v53 = vadd.f32 %v1286_v21, %v1265_v34  ;;  %v923_v44 = vadd.f32 %v907_v38, %v885_v2  ;;  %v481_v13 = vadd.s32 144, %v2298_v31  ;;  %v1287_v0 = vmul.f32 %v2412_v16, %v1118_v9 }
 0x12a   : > { %v1071_v15 = vadd.f32 %v1055_v55, %v1034_v52  ;;  %v1019_v25 = vmul.f32 %v2365_v62, %v2759_v24  ;;  %v870_v23 = vmul.f32 %v2324_v42, %v2761_v47  ;;  %v772_v6 = vsel %vm770_vm0, %v767_v58, %v768_v45 }
 0x12b   : > { %1318 = vst [vmem:[%s2270_s7 + $0x58] sm:$0xff] %v1302_v53  ;;  %v961_v28 = vadd.f32 %v945_v57, %v923_v44  ;;  %v613_v61 = vand.u32 15, %v481_v13  ;;  %v908_v18 = vmul.f32 %v2333_v46, %v847_v20  ;;  %vm1092_vm5 = vcmp.lt.s32.totalorder %v606_v19, 15 }
 0x12c   : > { %v1229_v54 = vadd.f32 %v1213_v29, %v1071_v15  ;;  %v1117_v40 = vsel %vm1115_vm4, %v1112_v14, %v1113_v41  ;;  %v886_v36 = vadd.f32 %v2311_v39, %v870_v23  ;;  %v1056_v21 = vmul.f32 %v2370_v63, %v2818_v1 }
 0x12d   : > { %v998_v26 = vadd.f32 %v982_v17, %v961_v28  ;;  %v1214_v47 = vmul.f32 %v2386_v7, %v2765_v50  ;;  %vm748_vm6 = vcmp.gt.s32.totalorder %v613_v61, 0  ;;  %v1251_v58 = vmul.f32 %v2391_v8, %v2834_v3 }
 0x12e   : > { %v1266_v32 = vadd.f32 %v1250_v51, %v1229_v54  ;;  %v849_v20 = vsel %vm748_vm6, %v772_v6, 0.0  ;;  %v924_v4 = vadd.f32 %v908_v18, %v886_v36  ;;  %v1193_v43 = vsel %vm1092_vm5, %v1117_v40, 0.0 }
 0x12f   : > { %v1035_v37 = vadd.f32 %v1019_v25, %v998_v26  ;;  %v946_v14 = vmul.f32 %v2338_v48, %v849_v20  ;;  %v983_v55 = vmul.f32 %v2353_v56, %v2723_v10  ;;  %v1114_v60 = vrot.slane %v2296_v30, 1 }
 0x130   : > { %v1303_v29 = vadd.f32 %v1287_v0, %v1266_v32  ;;  %v482_v50 = vadd.s32 152, %v2298_v31  ;;  %v771_v11 = vsel %vm770_vm0, %v768_v45, %v769_v35  ;;  %v1020_v34 = vmul.f32 %v2365_v62, %v2778_v27 }
 0x131   : > { %v1072_v51 = vadd.f32 %v1056_v21, %v1035_v37  ;;  %v962_v38 = vadd.f32 %v946_v14, %v924_v4  ;;  %v871_v2 = vmul.f32 %v2324_v42, %v2789_v59  ;;  %v1288_v10 = vmul.f32 %v2412_v16, %v1193_v43 }
 0x132   : > { %1319 = vst [vmem:[%s2270_s7 + $0x60] sm:$0xff] %v1303_v29  ;;  %v1057_v57 = vmul.f32 %v2370_v63, %v2846_v33  ;;  %v909_v52 = vmul.f32 %v2333_v46, %v773_v5  ;;  %v947_v45 = vmul.f32 %v2338_v48, %v771_v11  ;;  %v1116_v27 = vsel %vm1115_vm4, %v1113_v41, %v1114_v60 }
 0x133   : > { %v1230_v19 = vadd.f32 %v1214_v47, %v1072_v51  ;;  %v999_v53 = vadd.f32 %v983_v55, %v962_v38  ;;  %v887_v35 = vadd.f32 %v2311_v39, %v871_v2  ;;  %v1215_v42 = vmul.f32 %v2386_v7, %v2798_v12 }
 0x134   : > { %v620_v59 = vand.u32 15, %v482_v50  ;;  %v984_v46 = vmul.f32 %v2353_v56, %v2759_v24  ;;  %v1252_v39 = vmul.f32 %v2391_v8, %v1118_v9  ;;  %v1021_v41 = vmul.f32 %v2365_v62, %v2818_v1 }
 0x135   : > { %v1267_v44 = vadd.f32 %v1251_v58, %v1230_v19  ;;  %v1036_v17 = vadd.f32 %v1020_v34, %v999_v53  ;;  %v925_v33 = vadd.f32 %v909_v52, %v887_v35  ;;  %v1289_v15 = vmul.f32 %v2412_v16, %v1116_v27 }
 0x136   : > { %v1058_v12 = vmul.f32 %v2370_v63, %v2296_v30  ;;  %vm1094_vm0 = vcmp.lt.s32.totalorder %v620_v59, 15  ;;  %v1135_v56 = vsel %vm1115_vm4, %v1114_v60, %v1095_v49  ;;  %v1216_v1 = vmul.f32 %v2386_v7, %v2834_v3 }
 0x137   : > { %v1304_v5 = vadd.f32 %v1288_v10, %v1267_v44  ;;  %v1073_v13 = vadd.f32 %v1057_v57, %v1036_v17  ;;  %v963_v48 = vadd.f32 %v947_v45, %v925_v33  ;;  %v1195_v30 = vsel %vm1094_vm0, %v1135_v56, 0.0 }
 0x138   : > { %v1253_v23 = vmul.f32 %v2391_v8, %v1193_v43  ;;  %v1290_v31 = vmul.f32 %v2412_v16, %v1195_v30 }
 0x139   : > { %1320 = vst [vmem:[%s2270_s7 + $0x68] sm:$0xff] %v1304_v5  ;;  %v1231_v0 = vadd.f32 %v1215_v42, %v1073_v13  ;;  %v1000_v25 = vadd.f32 %v984_v46, %v963_v48 }
 0x13b   : > { %v1268_v24 = vadd.f32 %v1252_v39, %v1231_v0  ;;  %v1037_v62 = vadd.f32 %v1021_v41, %v1000_v25 }
 0x13d   : > { %v1305_v63 = vadd.f32 %v1289_v15, %v1268_v24  ;;  %v1074_v9 = vadd.f32 %v1058_v12, %v1037_v62 }
 0x13f   : > { %1321 = vst [vmem:[%s2270_s7 + $0x70] sm:$0xff] %v1305_v63  ;;  %v1232_v22 = vadd.f32 %v1216_v1, %v1074_v9 }
 0x141   : > { %v1269_v49 = vadd.f32 %v1253_v23, %v1232_v22 }
 0x143   : > { %v1306_v7 = vadd.f32 %v1290_v31, %v1269_v49 }
 0x145   : > { %1322 = vst [vmem:[%s2270_s7 + $0x78] sm:$0xff] %v1306_v7 }
 0x146   : > { %1779 = shalt.err (!%p1776_p13)
}
 0x147   : > { %s1780_s7 = scalar_lea.hbm %s2939_s18, 2048  ;;  %s1784_s9 = scalar_lea.hbm %s3114_s4, 8192 }
 0x148   : > { %p1781_p0 = scmp.ne.s32.totalorder %s2939_s18, %s1780_s7  ;;  %p1785_p4 = scmp.lt.s32.totalorder %s2939_s18, %s3114_s4 }
 0x149   : > { %p1786_p12 = scmp.lt.s32.totalorder %s1784_s9, %s1780_s7 }
 0x14a   : > { %p1782_p2 = pnand %p1781_p0, %p3115_p3 }
 0x14b   : > { %p1787_p7 = por %p1786_p12, %p1785_p4 }
 0x14c   : > { %p1783_p11 = pneg %p1782_p2 }
 0x14e   : > { %p1788_p9 = pnand %p1787_p7, %p1783_p11 }
 0x150   : > { %1791 = shalt.err (!%p1788_p9)
}
 0x151   : > { %s1928_s30 = smov 128   ;;  %s1929_s10 = smov 8  }
 0x152   : > { %1546 = dma.vmem_to_hbm [thread:$0]  (%p3115_p3), %s2934_s26, 2048, %s2939_s18, %s1324_s27, %s1928_s30, %s1928_s30, %s1929_s10  }
 0x153 PF: > { %p1563_p1 = scmp.ge.s32.totalorder %s1918_s6, 2  ;;  %s1354_s28 = sand.u32 1, %s1890_s24  }
 0x154   : > { %p3116_p8 = scmp.ne.s32.totalorder %s3072_s17, 0  ;;  %s1355_s21 = scalar_lea.sflag [#allocation5], %s1354_s28 }
 0x156   : > { %p1559_p5 = pnand %p1563_p1, %p3116_p8 }
 0x158   : > { %p1560_p6 = pneg %p1559_p5 }
 0x15a   : > { %1861 = dma.done.wait (%p1560_p6), %s1355_s21, 2048  }
 0x15b   : > { %1863 = vsyncadd (%p1560_p6), %s1355_s21, 4294965248  ;;  %s24_s6 = sadd.s32 1, %s1918_s6   ;;  %s3118_s21 = sld [smem:[#allocation14_spill]] }
 0x15c   : > { %p2970_p10 = scmp.ge.s32.totalorder %s24_s6, 6   ;;  %s3119_s22 = sld [smem:[#allocation15_spill]] }
 0x15d   : > { %s3120_s23 = sld [smem:[#allocation25_spill]]  ;;  %s3127_s18 = smov %s1870_s19 }
 0x15e   : > { %s3121_s16 = sld [smem:[#allocation16_spill]]  ;;  %s3128_s19 = smov %s1874_s20 }
 0x15f   : > { %s3122_s26 = sld [smem:[#allocation26_spill]]  ;;  %s3129_s20 = smov %s2198_s5 }
 0x160   : > { %s3123_s27 = sld [smem:[#allocation19_spill]]  ;;  %s3130_s24 = smov %s1894_s25 }
 0x161   : > { %s3124_s28 = sld [smem:[#allocation20_spill]]  ;;  %23 = sbr.rel (!%p2970_p10) target bundleno = 19 (0x13), region = 127 }
 0x162   : > { %s3125_s29 = sld [smem:[#allocation21_spill]] }
 0x163   : > { %s3126_s30 = sld [smem:[#allocation22_spill]] }
 0x164   : > { %s3131_s25 = smov %s3121_s16 }
 0x166   :  { %1360 = vsyncpa [#allocation4], 1 }
 0x167   :  { %1362 = vsyncpa [#allocation4 + $0x1], 1 }
 0x168   :  { %1363 = vsyncpa [#allocation7], 1 }
 0x169   :  { %1365 = vsyncpa [#allocation7 + $0x1], 1 }
 0x16a   :  { %1366 = vsyncpa [#allocation5], 1 }
 0x16b   :  { %1368 = vsyncpa [#allocation5 + $0x1], 1 }

</bundles_post_ra>
